<compile_context>
chip_gen: v7x
topology: tpu7x:2x2x1
jax: 0.10.0
libtpu: 0.0.40
codegen_flags: <defaults>
</compile_context>

<pallas_src>
import functools

import numpy as np
import jax
import jax.numpy as jnp
from jax.experimental import pallas as pl
from jax.experimental.pallas import tpu as pltpu


# Architecture constants fixed by the PyTorch module.
K1, S1, C1OUT = 8, 4, 16      # conv1: kernel 8, stride 4, 16 out channels
K2, S2, C2OUT = 4, 2, 32      # conv2: kernel 4, stride 2, 32 out channels
HIDDEN = 256


def conv2d_output_size(n, k, s):
    return (n - k) // s + 1


def _active_conv1_positions(oh1, ow1, oh2, ow2):
    """conv1 output positions that feed at least one conv2 output (sorted)."""
    return tuple(sorted({(i * S2 + dy) * ow1 + (j * S2 + dx)
                         for i in range(oh2) for j in range(ow2)
                         for dy in range(K2) for dx in range(K2)}))


# ----------------------------------------------------------------------------
# Fused Pallas kernel: conv1 -> conv2 -> hidden -> head for ONE batch tile.
# ----------------------------------------------------------------------------
def _dqn_fused_kernel(patches_ref, w1_ref, b1_ref, w2_ref, b2_ref,
                      wh_ref, bh_ref, whd_ref, bhd_ref,
                      hidden_ref, headp_ref, h1_ref,
                      *, active_pos, tb):
    f32, bf16 = jnp.float32, jnp.bfloat16
    lin_in = w2_ref.shape[2]                      # 32 * n_pos2 (torch flatten width)

    # ---- conv1: ONE MXU matmul over the whole tile (M = p1*TB, K = K1*K1*C) --
    h1 = jnp.dot(patches_ref[...], w1_ref[...], preferred_element_type=f32)
    h1_ref[...] = jnp.maximum(h1 + b1_ref[...], 0.0).astype(bf16)   # (p1*TB, 16)

    # ---- conv2 + NCHW flatten as dense per-position matmuls ------------------
    # Rows [p*TB, (p+1)*TB) of h1 are the conv1 outputs of position p for every
    # element of the tile (position-major layout) -> contiguous, aligned slices.
    acc = jnp.zeros((tb, lin_in), f32)
    for i, p in enumerate(active_pos):                              # static unroll
        lhs = h1_ref[pl.ds(p * tb, tb), :]                          # (TB, 16)
        acc = acc + jnp.dot(lhs, w2_ref[i], preferred_element_type=f32)
    h2 = jnp.maximum(acc + b2_ref[...], 0.0).astype(bf16)           # (TB, lin_in)

    # ---- hidden linear: one lane-dense (TB, 256) dot -------------------------
    hid = jnp.dot(h2, wh_ref[...], preferred_element_type=f32) + bh_ref[...]
    hidden_ref[...] = hid                                           # pre-ReLU hidden_out

    # ---- head on ReLU(hidden); weights pre-padded to a 128-lane output -------
    headp_ref[...] = (jnp.dot(jnp.maximum(hid, 0.0).astype(bf16), whd_ref[...],
                              preferred_element_type=f32) + bhd_ref[...])


# ----------------------------------------------------------------------------
# conv1 im2col via static strided slices (XLA side, no advanced-index gather).
# Column order is (kh, kw, C); the matching weight layout is built at init.
# ----------------------------------------------------------------------------
def _im2col_nhwc(x_nhwc, kh, kw, stride):
    B, H, W, C = x_nhwc.shape
    oh = conv2d_output_size(H, kh, stride)
    ow = conv2d_output_size(W, kw, stride)
    cols = []
    for dy in range(kh):
        for dx in range(kw):
            sl = jax.lax.slice(
                x_nhwc, (0, dy, dx, 0),
                (B, dy + (oh - 1) * stride + 1, dx + (ow - 1) * stride + 1, C),
                (1, stride, stride, 1))                          # (B, oh, ow, C)
            cols.append(sl)
    p = jnp.stack(cols, axis=3)                                  # (B, oh, ow, kh*kw, C)
    return p.reshape(B, oh * ow, kh * kw * C)


# ----------------------------------------------------------------------------
# Parameters (torch convention) and one-time kernel-ready preprocessing.
# ----------------------------------------------------------------------------
def init_params(key, height, width, input_channels, outputs):
    convw = conv2d_output_size(conv2d_output_size(width, K1, S1), K2, S2)
    convh = conv2d_output_size(conv2d_output_size(height, K1, S1), K2, S2)
    lin_in = C2OUT * convw * convh
    ks = jax.random.split(key, 8)
    s = 0.05
    return {
        "conv1_w": jax.random.normal(ks[0], (C1OUT, input_channels, K1, K1), jnp.float32) * s,
        "conv1_b": jax.random.normal(ks[1], (C1OUT,), jnp.float32) * s,
        "conv2_w": jax.random.normal(ks[2], (C2OUT, C1OUT, K2, K2), jnp.float32) * s,
        "conv2_b": jax.random.normal(ks[3], (C2OUT,), jnp.float32) * s,
        # PyTorch Linear convention: weight is (out, in).
        "hidden_w": jax.random.normal(ks[4], (HIDDEN, lin_in), jnp.float32) * s,
        "hidden_b": jax.random.normal(ks[5], (HIDDEN,), jnp.float32) * s,
        "head_w": jax.random.normal(ks[6], (outputs, HIDDEN), jnp.float32) * s,
        "head_b": jax.random.normal(ks[7], (outputs,), jnp.float32) * s,
    }


def prepare_kernel_params(params, height, width, input_channels, outputs):
    """One-time prep: weight permutations, conv2+flatten folding into dense
    per-position slices, head padding to 128 lanes, bf16 casts."""
    oh1 = conv2d_output_size(height, K1, S1)
    ow1 = conv2d_output_size(width, K1, S1)
    oh2 = conv2d_output_size(oh1, K2, S2)
    ow2 = conv2d_output_size(ow1, K2, S2)
    p1, n_pos2 = oh1 * ow1, oh2 * ow2
    lin_in = C2OUT * n_pos2
    bf16, f32 = jnp.bfloat16, jnp.float32

    # conv1 weight OIHW -> (kh*kw*C, 16), matching the (kh, kw, C) patch order.
    w1 = np.asarray(params["conv1_w"], np.float32).transpose(2, 3, 1, 0)
    w1 = w1.reshape(K1 * K1 * input_channels, C1OUT)

    # Dense conv2 + flatten matrix, sliced per conv1 position p:
    #   wbig[p, cin, co*n_pos2 + s] = conv2_w[co, cin, dy, dx]
    # whenever position p == (i*S2+dy)*ow1 + (j*S2+dx) for conv2 output s=(i,j).
    # Column order co*n_pos2 + s is exactly the torch NCHW x.view(B,-1) order,
    # so hidden_w.T can be used directly afterwards.
    w2t = np.asarray(params["conv2_w"], np.float32)                 # (32, 16, K2, K2)
    wbig = np.zeros((p1, C1OUT, lin_in), np.float32)
    for i in range(oh2):
        for j in range(ow2):
            s = i * ow2 + j
            for dy in range(K2):
                for dx in range(K2):
                    p = (i * S2 + dy) * ow1 + (j * S2 + dx)
                    wbig[p, :, s::n_pos2] = w2t[:, :, dy, dx].T     # (cin, cout)
    active = _active_conv1_positions(oh1, ow1, oh2, ow2)
    w2 = wbig[list(active)]                                         # (n_active, 16, lin_in)

    b2 = np.repeat(np.asarray(params["conv2_b"], np.float32), n_pos2).reshape(1, lin_in)

    # Head weights zero-padded to a lane-dense 128-wide output block.
    head_pad = max(128, ((outputs + 127) // 128) * 128)
    whd = np.zeros((HIDDEN, head_pad), np.float32)
    whd[:, :outputs] = np.asarray(params["head_w"], np.float32).T
    bhd = np.zeros((1, head_pad), np.float32)
    bhd[0, :outputs] = np.asarray(params["head_b"], np.float32)

    return {
        "w1": jnp.asarray(w1, bf16),
        "b1": jnp.asarray(params["conv1_b"], f32).reshape(1, C1OUT),
        "w2": jnp.asarray(w2, bf16),
        "b2": jnp.asarray(b2, f32),
        "wh": jnp.asarray(np.asarray(params["hidden_w"], np.float32).T, bf16),
        "bh": jnp.asarray(params["hidden_b"], f32).reshape(1, HIDDEN),
        "whd": jnp.asarray(whd, bf16),
        "bhd": jnp.asarray(bhd, f32),
    }


# ----------------------------------------------------------------------------
# Fused forward: one pallas_call, grid over batch tiles (parallel).
# ----------------------------------------------------------------------------
def deep_q_network_forward(kparams, x_nchw, *, outputs, batch_tile=128):
    """Returns (head_out, hidden_out) exactly like the PyTorch module."""
    B, Cin, H, W = x_nchw.shape
    oh1 = conv2d_output_size(H, K1, S1)
    ow1 = conv2d_output_size(W, K1, S1)
    oh2 = conv2d_output_size(oh1, K2, S2)
    ow2 = conv2d_output_size(ow1, K2, S2)
    p1 = oh1 * ow1
    k1c = K1 * K1 * Cin
    active_pos = _active_conv1_positions(oh1, ow1, oh2, ow2)

    n_hidden = kparams["wh"].shape[1]
    head_pad = kparams["whd"].shape[1]
    assert kparams["w2"].shape[0] == len(active_pos)

    # Batch tile: multiple of 8, capped at batch_tile; pad B up to a multiple.
    TB = batch_tile if B >= batch_tile else ((B + 7) // 8) * 8
    TB = max(8, (TB // 8) * 8)
    B_pad = ((B + TB - 1) // TB) * TB
    n_tiles = B_pad // TB

    # XLA-side glue on the input path only: bf16 cast, NCHW->NHWC, static-slice
    # im2col, and a layout shuffle so each batch tile's patches form one
    # contiguous 2-D (p1*TB, k1c) slab with rows ordered p*TB + b.
    # (On v5e, very large batches could move this im2col in-kernel to cut HBM
    #  amplification; patches are kept bf16 to halve the streamed bytes.)
    x_nhwc = x_nchw.astype(jnp.bfloat16).transpose(0, 2, 3, 1)
    patches = _im2col_nhwc(x_nhwc, K1, K1, S1)                      # (B, p1, k1c)
    if B_pad != B:
        patches = jnp.pad(patches, ((0, B_pad - B), (0, 0), (0, 0)))
    patches = (patches.reshape(n_tiles, TB, p1, k1c)
                      .transpose(0, 2, 1, 3)
                      .reshape(n_tiles, p1 * TB, k1c))              # (n_tiles, p1*TB, k1c)

    kernel = functools.partial(_dqn_fused_kernel, active_pos=active_pos, tb=TB)
    const2 = lambda t: (0, 0)
    const3 = lambda t: (0, 0, 0)

    hidden_p, head_p = pl.pallas_call(
        kernel,
        out_shape=(jax.ShapeDtypeStruct((B_pad, n_hidden), jnp.float32),
                   jax.ShapeDtypeStruct((B_pad, head_pad), jnp.float32)),
        grid=(n_tiles,),
        in_specs=[
            # Streamed input: one 2-D patch slab per batch tile (leading dim squeezed).
            pl.BlockSpec((None, p1 * TB, k1c), lambda t: (t, 0, 0)),
            # Weights / biases: constant block indices -> DMA'd once, VMEM-resident.
            pl.BlockSpec(kparams["w1"].shape, const2),
            pl.BlockSpec(kparams["b1"].shape, const2),
            pl.BlockSpec(kparams["w2"].shape, const3),
            pl.BlockSpec(kparams["b2"].shape, const2),
            pl.BlockSpec(kparams["wh"].shape, const2),
            pl.BlockSpec(kparams["bh"].shape, const2),
            pl.BlockSpec(kparams["whd"].shape, const2),
            pl.BlockSpec(kparams["bhd"].shape, const2),
        ],
        out_specs=(pl.BlockSpec((TB, n_hidden), lambda t: (t, 0)),
                   pl.BlockSpec((TB, head_pad), lambda t: (t, 0))),
        scratch_shapes=[pltpu.VMEM((p1 * TB, C1OUT), jnp.bfloat16)],
        compiler_params=pltpu.CompilerParams(
            dimension_semantics=("parallel",)),
    )(patches, kparams["w1"], kparams["b1"], kparams["w2"], kparams["b2"],
      kparams["wh"], kparams["bh"], kparams["whd"], kparams["bhd"])

    return head_p[:B, :outputs], hidden_p[:B]


# ----------------------------------------------------------------------------
# Pure-JAX f32 reference for the correctness check.
# ----------------------------------------------------------------------------
def _reference_forward(params, x_nchw):
    def conv(x, w, b, stride):
        y = jax.lax.conv_general_dilated(
            x, w, window_strides=(stride, stride), padding="VALID",
            dimension_numbers=("NCHW", "OIHW", "NCHW"))
        return jax.nn.relu(y + b[None, :, None, None])
    h1 = conv(x_nchw, params["conv1_w"], params["conv1_b"], S1)
    h2 = conv(h1, params["conv2_w"], params["conv2_b"], S2)
    flat = h2.reshape(x_nchw.shape[0], -1)
    hidden = flat @ params["hidden_w"].T + params["hidden_b"]
    head = jax.nn.relu(hidden) @ params["head_w"].T + params["head_b"]
    return head, hidden


if __name__ == "__main__":
    key = jax.random.PRNGKey(0)
    k_param, k_x = jax.random.split(key)

    # Smallest spatial size consistent with the module's two convs is >= 20;
    # use 32x32 so conv shapes are non-degenerate.
    B, Cin, H, W, outputs = 2, 4, 32, 32, 8
    params = init_params(k_param, H, W, Cin, outputs)
    kparams = prepare_kernel_params(params, H, W, Cin, outputs)
    x = jax.random.normal(k_x, (B, Cin, H, W), jnp.float32)

    fwd = jax.jit(functools.partial(deep_q_network_forward, outputs=outputs))
    head_out, hidden_out = fwd(kparams, x)
    head_out = jax.block_until_ready(head_out)
    hidden_out = jax.block_until_ready(hidden_out)

    ref_head, ref_hidden = _reference_forward(params, x)
    assert head_out.shape == (B, outputs)
    assert hidden_out.shape == (B, HIDDEN)
    # bf16 MXU operands (f32 accumulation) -> relaxed tolerance vs f32 reference.
    assert jnp.allclose(head_out, ref_head, atol=3e-2, rtol=3e-2), \
        float(jnp.max(jnp.abs(head_out - ref_head)))
    assert jnp.allclose(hidden_out, ref_hidden, atol=3e-2, rtol=3e-2), \
        float(jnp.max(jnp.abs(hidden_out - ref_hidden)))

    print("KERNEL_OK")
</pallas_src>

<mosaic_0001>
module attributes {stable_mosaic.version = 11 : i64} {
  func.func @_dqn_fused_kernel(%arg0: i32, %arg1: memref<1x392x256xbf16, #tpu.memory_space<vmem>>, %arg2: memref<256x16xbf16, #tpu.memory_space<vmem>>, %arg3: memref<1x16xf32, #tpu.memory_space<vmem>>, %arg4: memref<36x16x128xbf16, #tpu.memory_space<vmem>>, %arg5: memref<1x128xf32, #tpu.memory_space<vmem>>, %arg6: memref<128x256xbf16, #tpu.memory_space<vmem>>, %arg7: memref<1x256xf32, #tpu.memory_space<vmem>>, %arg8: memref<256x128xbf16, #tpu.memory_space<vmem>>, %arg9: memref<1x128xf32, #tpu.memory_space<vmem>>, %arg10: memref<8x256xf32, #tpu.memory_space<vmem>>, %arg11: memref<8x128xf32, #tpu.memory_space<vmem>>, %arg12: memref<392x16xbf16, #tpu.memory_space<vmem>>) attributes {dimension_semantics = [#tpu.dimension_semantics<parallel>], iteration_bounds = array<i64: 1>, scalar_prefetch = 0 : i64, scratch_operands = 1 : i64, tpu.core_type = #tpu.core_type<tc>, window_params = [{transform_indices = @transform_0, window_bounds = array<i64: 1, 392, 256>}, {pipeline_mode = #tpu.pipeline_mode<synchronous>, transform_indices = @transform_1, window_bounds = array<i64: 256, 16>}, {pipeline_mode = #tpu.pipeline_mode<synchronous>, transform_indices = @transform_2, window_bounds = array<i64: 1, 16>}, {pipeline_mode = #tpu.pipeline_mode<synchronous>, transform_indices = @transform_3, window_bounds = array<i64: 36, 16, 128>}, {pipeline_mode = #tpu.pipeline_mode<synchronous>, transform_indices = @transform_4, window_bounds = array<i64: 1, 128>}, {pipeline_mode = #tpu.pipeline_mode<synchronous>, transform_indices = @transform_5, window_bounds = array<i64: 128, 256>}, {pipeline_mode = #tpu.pipeline_mode<synchronous>, transform_indices = @transform_6, window_bounds = array<i64: 1, 256>}, {pipeline_mode = #tpu.pipeline_mode<synchronous>, transform_indices = @transform_7, window_bounds = array<i64: 256, 128>}, {pipeline_mode = #tpu.pipeline_mode<synchronous>, transform_indices = @transform_8, window_bounds = array<i64: 1, 128>}, {transform_indices = @transform_9, window_bounds = array<i64: 8, 256>}, {transform_indices = @transform_10, window_bounds = array<i64: 8, 128>}]} {
    %c0 = arith.constant 0 : index
    %c0_0 = arith.constant 0 : index
    %c0_1 = arith.constant 0 : index
    %0 = vector.load %arg1[%c0, %c0_0, %c0_1] : memref<1x392x256xbf16, #tpu.memory_space<vmem>>, vector<1x392x256xbf16>
    %1 = vector.shape_cast %0 : vector<1x392x256xbf16> to vector<392x256xbf16>
    %c0_2 = arith.constant 0 : index
    %c0_3 = arith.constant 0 : index
    %2 = vector.load %arg2[%c0_2, %c0_3] : memref<256x16xbf16, #tpu.memory_space<vmem>>, vector<256x16xbf16>
    %cst = arith.constant dense<0.000000e+00> : vector<392x16xf32>
    %3 = tpu.matmul %1, %2, %cst {dimension_numbers = #tpu.dot_dimension_numbers<[1], [0], [0], [1], [0, 0, 1, 1], [], []>} : vector<392x256xbf16>, vector<256x16xbf16>, vector<392x16xf32> -> vector<392x16xf32>
    %c0_4 = arith.constant 0 : index
    %c0_5 = arith.constant 0 : index
    %4 = vector.load %arg3[%c0_4, %c0_5] : memref<1x16xf32, #tpu.memory_space<vmem>>, vector<1x16xf32>
    %5 = vector.broadcast %4 : vector<1x16xf32> to vector<392x16xf32>
    %6 = arith.addf %3, %5 : vector<392x16xf32>
    %cst_6 = arith.constant 0.000000e+00 : f32
    %7 = vector.broadcast %cst_6 : f32 to vector<392x16xf32>
    %8 = arith.maximumf %6, %7 : vector<392x16xf32>
    %9 = arith.truncf %8 : vector<392x16xf32> to vector<392x16xbf16>
    %c0_7 = arith.constant 0 : index
    %c0_8 = arith.constant 0 : index
    %10 = vector.load %arg12[%c0_7, %c0_8] : memref<392x16xbf16, #tpu.memory_space<vmem>>, vector<392x16xbf16>
    tpu.vector_store %arg12[%c0_7, %c0_8], %9 {strides = array<i32>} : memref<392x16xbf16, #tpu.memory_space<vmem>>, vector<392x16xbf16>,
    %cst_9 = arith.constant 0.000000e+00 : f32
    %11 = vector.broadcast %cst_9 : f32 to vector<8x128xf32>
    %c0_10 = arith.constant 0 : index
    %c0_11 = arith.constant 0 : index
    %12 = vector.load %arg12[%c0_10, %c0_11] : memref<392x16xbf16, #tpu.memory_space<vmem>>, vector<8x16xbf16>
    %c0_12 = arith.constant 0 : index
    %c0_13 = arith.constant 0 : index
    %c0_14 = arith.constant 0 : index
    %13 = vector.load %arg4[%c0_12, %c0_13, %c0_14] : memref<36x16x128xbf16, #tpu.memory_space<vmem>>, vector<1x16x128xbf16>
    %14 = vector.shape_cast %13 : vector<1x16x128xbf16> to vector<16x128xbf16>
    %cst_15 = arith.constant dense<0.000000e+00> : vector<8x128xf32>
    %15 = tpu.matmul %12, %14, %cst_15 {dimension_numbers = #tpu.dot_dimension_numbers<[1], [0], [0], [1], [0, 0, 1, 1], [], []>} : vector<8x16xbf16>, vector<16x128xbf16>, vector<8x128xf32> -> vector<8x128xf32>
    %16 = arith.addf %11, %15 : vector<8x128xf32>
    %c8 = arith.constant 8 : index
    %c0_16 = arith.constant 0 : index
    %17 = vector.load %arg12[%c8, %c0_16] : memref<392x16xbf16, #tpu.memory_space<vmem>>, vector<8x16xbf16>
    %c1 = arith.constant 1 : index
    %c0_17 = arith.constant 0 : index
    %c0_18 = arith.constant 0 : index
    %18 = vector.load %arg4[%c1, %c0_17, %c0_18] : memref<36x16x128xbf16, #tpu.memory_space<vmem>>, vector<1x16x128xbf16>
    %19 = vector.shape_cast %18 : vector<1x16x128xbf16> to vector<16x128xbf16>
    %cst_19 = arith.constant dense<0.000000e+00> : vector<8x128xf32>
    %20 = tpu.matmul %17, %19, %cst_19 {dimension_numbers = #tpu.dot_dimension_numbers<[1], [0], [0], [1], [0, 0, 1, 1], [], []>} : vector<8x16xbf16>, vector<16x128xbf16>, vector<8x128xf32> -> vector<8x128xf32>
    %21 = arith.addf %16, %20 : vector<8x128xf32>
    %c16 = arith.constant 16 : index
    %c0_20 = arith.constant 0 : index
    %22 = vector.load %arg12[%c16, %c0_20] : memref<392x16xbf16, #tpu.memory_space<vmem>>, vector<8x16xbf16>
    %c2 = arith.constant 2 : index
    %c0_21 = arith.constant 0 : index
    %c0_22 = arith.constant 0 : index
    %23 = vector.load %arg4[%c2, %c0_21, %c0_22] : memref<36x16x128xbf16, #tpu.memory_space<vmem>>, vector<1x16x128xbf16>
    %24 = vector.shape_cast %23 : vector<1x16x128xbf16> to vector<16x128xbf16>
    %cst_23 = arith.constant dense<0.000000e+00> : vector<8x128xf32>
    %25 = tpu.matmul %22, %24, %cst_23 {dimension_numbers = #tpu.dot_dimension_numbers<[1], [0], [0], [1], [0, 0, 1, 1], [], []>} : vector<8x16xbf16>, vector<16x128xbf16>, vector<8x128xf32> -> vector<8x128xf32>
    %26 = arith.addf %21, %25 : vector<8x128xf32>
    %c24 = arith.constant 24 : index
    %c0_24 = arith.constant 0 : index
    %27 = vector.load %arg12[%c24, %c0_24] : memref<392x16xbf16, #tpu.memory_space<vmem>>, vector<8x16xbf16>
    %c3 = arith.constant 3 : index
    %c0_25 = arith.constant 0 : index
    %c0_26 = arith.constant 0 : index
    %28 = vector.load %arg4[%c3, %c0_25, %c0_26] : memref<36x16x128xbf16, #tpu.memory_space<vmem>>, vector<1x16x128xbf16>
    %29 = vector.shape_cast %28 : vector<1x16x128xbf16> to vector<16x128xbf16>
    %cst_27 = arith.constant dense<0.000000e+00> : vector<8x128xf32>
    %30 = tpu.matmul %27, %29, %cst_27 {dimension_numbers = #tpu.dot_dimension_numbers<[1], [0], [0], [1], [0, 0, 1, 1], [], []>} : vector<8x16xbf16>, vector<16x128xbf16>, vector<8x128xf32> -> vector<8x128xf32>
    %31 = arith.addf %26, %30 : vector<8x128xf32>
    %c32 = arith.constant 32 : index
    %c0_28 = arith.constant 0 : index
    %32 = vector.load %arg12[%c32, %c0_28] : memref<392x16xbf16, #tpu.memory_space<vmem>>, vector<8x16xbf16>
    %c4 = arith.constant 4 : index
    %c0_29 = arith.constant 0 : index
    %c0_30 = arith.constant 0 : index
    %33 = vector.load %arg4[%c4, %c0_29, %c0_30] : memref<36x16x128xbf16, #tpu.memory_space<vmem>>, vector<1x16x128xbf16>
    %34 = vector.shape_cast %33 : vector<1x16x128xbf16> to vector<16x128xbf16>
    %cst_31 = arith.constant dense<0.000000e+00> : vector<8x128xf32>
    %35 = tpu.matmul %32, %34, %cst_31 {dimension_numbers = #tpu.dot_dimension_numbers<[1], [0], [0], [1], [0, 0, 1, 1], [], []>} : vector<8x16xbf16>, vector<16x128xbf16>, vector<8x128xf32> -> vector<8x128xf32>
    %36 = arith.addf %31, %35 : vector<8x128xf32>
    %c40 = arith.constant 40 : index
    %c0_32 = arith.constant 0 : index
    %37 = vector.load %arg12[%c40, %c0_32] : memref<392x16xbf16, #tpu.memory_space<vmem>>, vector<8x16xbf16>
    %c5 = arith.constant 5 : index
    %c0_33 = arith.constant 0 : index
    %c0_34 = arith.constant 0 : index
    %38 = vector.load %arg4[%c5, %c0_33, %c0_34] : memref<36x16x128xbf16, #tpu.memory_space<vmem>>, vector<1x16x128xbf16>
    %39 = vector.shape_cast %38 : vector<1x16x128xbf16> to vector<16x128xbf16>
    %cst_35 = arith.constant dense<0.000000e+00> : vector<8x128xf32>
    %40 = tpu.matmul %37, %39, %cst_35 {dimension_numbers = #tpu.dot_dimension_numbers<[1], [0], [0], [1], [0, 0, 1, 1], [], []>} : vector<8x16xbf16>, vector<16x128xbf16>, vector<8x128xf32> -> vector<8x128xf32>
    %41 = arith.addf %36, %40 : vector<8x128xf32>
    %c56 = arith.constant 56 : index
    %c0_36 = arith.constant 0 : index
    %42 = vector.load %arg12[%c56, %c0_36] : memref<392x16xbf16, #tpu.memory_space<vmem>>, vector<8x16xbf16>
    %c6 = arith.constant 6 : index
    %c0_37 = arith.constant 0 : index
    %c0_38 = arith.constant 0 : index
    %43 = vector.load %arg4[%c6, %c0_37, %c0_38] : memref<36x16x128xbf16, #tpu.memory_space<vmem>>, vector<1x16x128xbf16>
    %44 = vector.shape_cast %43 : vector<1x16x128xbf16> to vector<16x128xbf16>
    %cst_39 = arith.constant dense<0.000000e+00> : vector<8x128xf32>
    %45 = tpu.matmul %42, %44, %cst_39 {dimension_numbers = #tpu.dot_dimension_numbers<[1], [0], [0], [1], [0, 0, 1, 1], [], []>} : vector<8x16xbf16>, vector<16x128xbf16>, vector<8x128xf32> -> vector<8x128xf32>
    %46 = arith.addf %41, %45 : vector<8x128xf32>
    %c64 = arith.constant 64 : index
    %c0_40 = arith.constant 0 : index
    %47 = vector.load %arg12[%c64, %c0_40] : memref<392x16xbf16, #tpu.memory_space<vmem>>, vector<8x16xbf16>
    %c7 = arith.constant 7 : index
    %c0_41 = arith.constant 0 : index
    %c0_42 = arith.constant 0 : index
    %48 = vector.load %arg4[%c7, %c0_41, %c0_42] : memref<36x16x128xbf16, #tpu.memory_space<vmem>>, vector<1x16x128xbf16>
    %49 = vector.shape_cast %48 : vector<1x16x128xbf16> to vector<16x128xbf16>
    %cst_43 = arith.constant dense<0.000000e+00> : vector<8x128xf32>
    %50 = tpu.matmul %47, %49, %cst_43 {dimension_numbers = #tpu.dot_dimension_numbers<[1], [0], [0], [1], [0, 0, 1, 1], [], []>} : vector<8x16xbf16>, vector<16x128xbf16>, vector<8x128xf32> -> vector<8x128xf32>
    %51 = arith.addf %46, %50 : vector<8x128xf32>
    %c72 = arith.constant 72 : index
    %c0_44 = arith.constant 0 : index
    %52 = vector.load %arg12[%c72, %c0_44] : memref<392x16xbf16, #tpu.memory_space<vmem>>, vector<8x16xbf16>
    %c8_45 = arith.constant 8 : index
    %c0_46 = arith.constant 0 : index
    %c0_47 = arith.constant 0 : index
    %53 = vector.load %arg4[%c8_45, %c0_46, %c0_47] : memref<36x16x128xbf16, #tpu.memory_space<vmem>>, vector<1x16x128xbf16>
    %54 = vector.shape_cast %53 : vector<1x16x128xbf16> to vector<16x128xbf16>
    %cst_48 = arith.constant dense<0.000000e+00> : vector<8x128xf32>
    %55 = tpu.matmul %52, %54, %cst_48 {dimension_numbers = #tpu.dot_dimension_numbers<[1], [0], [0], [1], [0, 0, 1, 1], [], []>} : vector<8x16xbf16>, vector<16x128xbf16>, vector<8x128xf32> -> vector<8x128xf32>
    %56 = arith.addf %51, %55 : vector<8x128xf32>
    %c80 = arith.constant 80 : index
    %c0_49 = arith.constant 0 : index
    %57 = vector.load %arg12[%c80, %c0_49] : memref<392x16xbf16, #tpu.memory_space<vmem>>, vector<8x16xbf16>
    %c9 = arith.constant 9 : index
    %c0_50 = arith.constant 0 : index
    %c0_51 = arith.constant 0 : index
    %58 = vector.load %arg4[%c9, %c0_50, %c0_51] : memref<36x16x128xbf16, #tpu.memory_space<vmem>>, vector<1x16x128xbf16>
    %59 = vector.shape_cast %58 : vector<1x16x128xbf16> to vector<16x128xbf16>
    %cst_52 = arith.constant dense<0.000000e+00> : vector<8x128xf32>
    %60 = tpu.matmul %57, %59, %cst_52 {dimension_numbers = #tpu.dot_dimension_numbers<[1], [0], [0], [1], [0, 0, 1, 1], [], []>} : vector<8x16xbf16>, vector<16x128xbf16>, vector<8x128xf32> -> vector<8x128xf32>
    %61 = arith.addf %56, %60 : vector<8x128xf32>
    %c88 = arith.constant 88 : index
    %c0_53 = arith.constant 0 : index
    %62 = vector.load %arg12[%c88, %c0_53] : memref<392x16xbf16, #tpu.memory_space<vmem>>, vector<8x16xbf16>
    %c10 = arith.constant 10 : index
    %c0_54 = arith.constant 0 : index
    %c0_55 = arith.constant 0 : index
    %63 = vector.load %arg4[%c10, %c0_54, %c0_55] : memref<36x16x128xbf16, #tpu.memory_space<vmem>>, vector<1x16x128xbf16>
    %64 = vector.shape_cast %63 : vector<1x16x128xbf16> to vector<16x128xbf16>
    %cst_56 = arith.constant dense<0.000000e+00> : vector<8x128xf32>
    %65 = tpu.matmul %62, %64, %cst_56 {dimension_numbers = #tpu.dot_dimension_numbers<[1], [0], [0], [1], [0, 0, 1, 1], [], []>} : vector<8x16xbf16>, vector<16x128xbf16>, vector<8x128xf32> -> vector<8x128xf32>
    %66 = arith.addf %61, %65 : vector<8x128xf32>
    %c96 = arith.constant 96 : index
    %c0_57 = arith.constant 0 : index
    %67 = vector.load %arg12[%c96, %c0_57] : memref<392x16xbf16, #tpu.memory_space<vmem>>, vector<8x16xbf16>
    %c11 = arith.constant 11 : index
    %c0_58 = arith.constant 0 : index
    %c0_59 = arith.constant 0 : index
    %68 = vector.load %arg4[%c11, %c0_58, %c0_59] : memref<36x16x128xbf16, #tpu.memory_space<vmem>>, vector<1x16x128xbf16>
    %69 = vector.shape_cast %68 : vector<1x16x128xbf16> to vector<16x128xbf16>
    %cst_60 = arith.constant dense<0.000000e+00> : vector<8x128xf32>
    %70 = tpu.matmul %67, %69, %cst_60 {dimension_numbers = #tpu.dot_dimension_numbers<[1], [0], [0], [1], [0, 0, 1, 1], [], []>} : vector<8x16xbf16>, vector<16x128xbf16>, vector<8x128xf32> -> vector<8x128xf32>
    %71 = arith.addf %66, %70 : vector<8x128xf32>
    %c112 = arith.constant 112 : index
    %c0_61 = arith.constant 0 : index
    %72 = vector.load %arg12[%c112, %c0_61] : memref<392x16xbf16, #tpu.memory_space<vmem>>, vector<8x16xbf16>
    %c12 = arith.constant 12 : index
    %c0_62 = arith.constant 0 : index
    %c0_63 = arith.constant 0 : index
    %73 = vector.load %arg4[%c12, %c0_62, %c0_63] : memref<36x16x128xbf16, #tpu.memory_space<vmem>>, vector<1x16x128xbf16>
    %74 = vector.shape_cast %73 : vector<1x16x128xbf16> to vector<16x128xbf16>
    %cst_64 = arith.constant dense<0.000000e+00> : vector<8x128xf32>
    %75 = tpu.matmul %72, %74, %cst_64 {dimension_numbers = #tpu.dot_dimension_numbers<[1], [0], [0], [1], [0, 0, 1, 1], [], []>} : vector<8x16xbf16>, vector<16x128xbf16>, vector<8x128xf32> -> vector<8x128xf32>
    %76 = arith.addf %71, %75 : vector<8x128xf32>
    %c120 = arith.constant 120 : index
    %c0_65 = arith.constant 0 : index
    %77 = vector.load %arg12[%c120, %c0_65] : memref<392x16xbf16, #tpu.memory_space<vmem>>, vector<8x16xbf16>
    %c13 = arith.constant 13 : index
    %c0_66 = arith.constant 0 : index
    %c0_67 = arith.constant 0 : index
    %78 = vector.load %arg4[%c13, %c0_66, %c0_67] : memref<36x16x128xbf16, #tpu.memory_space<vmem>>, vector<1x16x128xbf16>
    %79 = vector.shape_cast %78 : vector<1x16x128xbf16> to vector<16x128xbf16>
    %cst_68 = arith.constant dense<0.000000e+00> : vector<8x128xf32>
    %80 = tpu.matmul %77, %79, %cst_68 {dimension_numbers = #tpu.dot_dimension_numbers<[1], [0], [0], [1], [0, 0, 1, 1], [], []>} : vector<8x16xbf16>, vector<16x128xbf16>, vector<8x128xf32> -> vector<8x128xf32>
    %81 = arith.addf %76, %80 : vector<8x128xf32>
    %c128 = arith.constant 128 : index
    %c0_69 = arith.constant 0 : index
    %82 = vector.load %arg12[%c128, %c0_69] : memref<392x16xbf16, #tpu.memory_space<vmem>>, vector<8x16xbf16>
    %c14 = arith.constant 14 : index
    %c0_70 = arith.constant 0 : index
    %c0_71 = arith.constant 0 : index
    %83 = vector.load %arg4[%c14, %c0_70, %c0_71] : memref<36x16x128xbf16, #tpu.memory_space<vmem>>, vector<1x16x128xbf16>
    %84 = vector.shape_cast %83 : vector<1x16x128xbf16> to vector<16x128xbf16>
    %cst_72 = arith.constant dense<0.000000e+00> : vector<8x128xf32>
    %85 = tpu.matmul %82, %84, %cst_72 {dimension_numbers = #tpu.dot_dimension_numbers<[1], [0], [0], [1], [0, 0, 1, 1], [], []>} : vector<8x16xbf16>, vector<16x128xbf16>, vector<8x128xf32> -> vector<8x128xf32>
    %86 = arith.addf %81, %85 : vector<8x128xf32>
    %c136 = arith.constant 136 : index
    %c0_73 = arith.constant 0 : index
    %87 = vector.load %arg12[%c136, %c0_73] : memref<392x16xbf16, #tpu.memory_space<vmem>>, vector<8x16xbf16>
    %c15 = arith.constant 15 : index
    %c0_74 = arith.constant 0 : index
    %c0_75 = arith.constant 0 : index
    %88 = vector.load %arg4[%c15, %c0_74, %c0_75] : memref<36x16x128xbf16, #tpu.memory_space<vmem>>, vector<1x16x128xbf16>
    %89 = vector.shape_cast %88 : vector<1x16x128xbf16> to vector<16x128xbf16>
    %cst_76 = arith.constant dense<0.000000e+00> : vector<8x128xf32>
    %90 = tpu.matmul %87, %89, %cst_76 {dimension_numbers = #tpu.dot_dimension_numbers<[1], [0], [0], [1], [0, 0, 1, 1], [], []>} : vector<8x16xbf16>, vector<16x128xbf16>, vector<8x128xf32> -> vector<8x128xf32>
    %91 = arith.addf %86, %90 : vector<8x128xf32>
    %c144 = arith.constant 144 : index
    %c0_77 = arith.constant 0 : index
    %92 = vector.load %arg12[%c144, %c0_77] : memref<392x16xbf16, #tpu.memory_space<vmem>>, vector<8x16xbf16>
    %c16_78 = arith.constant 16 : index
    %c0_79 = arith.constant 0 : index
    %c0_80 = arith.constant 0 : index
    %93 = vector.load %arg4[%c16_78, %c0_79, %c0_80] : memref<36x16x128xbf16, #tpu.memory_space<vmem>>, vector<1x16x128xbf16>
    %94 = vector.shape_cast %93 : vector<1x16x128xbf16> to vector<16x128xbf16>
    %cst_81 = arith.constant dense<0.000000e+00> : vector<8x128xf32>
    %95 = tpu.matmul %92, %94, %cst_81 {dimension_numbers = #tpu.dot_dimension_numbers<[1], [0], [0], [1], [0, 0, 1, 1], [], []>} : vector<8x16xbf16>, vector<16x128xbf16>, vector<8x128xf32> -> vector<8x128xf32>
    %96 = arith.addf %91, %95 : vector<8x128xf32>
    %c152 = arith.constant 152 : index
    %c0_82 = arith.constant 0 : index
    %97 = vector.load %arg12[%c152, %c0_82] : memref<392x16xbf16, #tpu.memory_space<vmem>>, vector<8x16xbf16>
    %c17 = arith.constant 17 : index
    %c0_83 = arith.constant 0 : index
    %c0_84 = arith.constant 0 : index
    %98 = vector.load %arg4[%c17, %c0_83, %c0_84] : memref<36x16x128xbf16, #tpu.memory_space<vmem>>, vector<1x16x128xbf16>
    %99 = vector.shape_cast %98 : vector<1x16x128xbf16> to vector<16x128xbf16>
    %cst_85 = arith.constant dense<0.000000e+00> : vector<8x128xf32>
    %100 = tpu.matmul %97, %99, %cst_85 {dimension_numbers = #tpu.dot_dimension_numbers<[1], [0], [0], [1], [0, 0, 1, 1], [], []>} : vector<8x16xbf16>, vector<16x128xbf16>, vector<8x128xf32> -> vector<8x128xf32>
    %101 = arith.addf %96, %100 : vector<8x128xf32>
    %c168 = arith.constant 168 : index
    %c0_86 = arith.constant 0 : index
    %102 = vector.load %arg12[%c168, %c0_86] : memref<392x16xbf16, #tpu.memory_space<vmem>>, vector<8x16xbf16>
    %c18 = arith.constant 18 : index
    %c0_87 = arith.constant 0 : index
    %c0_88 = arith.constant 0 : index
    %103 = vector.load %arg4[%c18, %c0_87, %c0_88] : memref<36x16x128xbf16, #tpu.memory_space<vmem>>, vector<1x16x128xbf16>
    %104 = vector.shape_cast %103 : vector<1x16x128xbf16> to vector<16x128xbf16>
    %cst_89 = arith.constant dense<0.000000e+00> : vector<8x128xf32>
    %105 = tpu.matmul %102, %104, %cst_89 {dimension_numbers = #tpu.dot_dimension_numbers<[1], [0], [0], [1], [0, 0, 1, 1], [], []>} : vector<8x16xbf16>, vector<16x128xbf16>, vector<8x128xf32> -> vector<8x128xf32>
    %106 = arith.addf %101, %105 : vector<8x128xf32>
    %c176 = arith.constant 176 : index
    %c0_90 = arith.constant 0 : index
    %107 = vector.load %arg12[%c176, %c0_90] : memref<392x16xbf16, #tpu.memory_space<vmem>>, vector<8x16xbf16>
    %c19 = arith.constant 19 : index
    %c0_91 = arith.constant 0 : index
    %c0_92 = arith.constant 0 : index
    %108 = vector.load %arg4[%c19, %c0_91, %c0_92] : memref<36x16x128xbf16, #tpu.memory_space<vmem>>, vector<1x16x128xbf16>
    %109 = vector.shape_cast %108 : vector<1x16x128xbf16> to vector<16x128xbf16>
    %cst_93 = arith.constant dense<0.000000e+00> : vector<8x128xf32>
    %110 = tpu.matmul %107, %109, %cst_93 {dimension_numbers = #tpu.dot_dimension_numbers<[1], [0], [0], [1], [0, 0, 1, 1], [], []>} : vector<8x16xbf16>, vector<16x128xbf16>, vector<8x128xf32> -> vector<8x128xf32>
    %111 = arith.addf %106, %110 : vector<8x128xf32>
    %c184 = arith.constant 184 : index
    %c0_94 = arith.constant 0 : index
    %112 = vector.load %arg12[%c184, %c0_94] : memref<392x16xbf16, #tpu.memory_space<vmem>>, vector<8x16xbf16>
    %c20 = arith.constant 20 : index
    %c0_95 = arith.constant 0 : index
    %c0_96 = arith.constant 0 : index
    %113 = vector.load %arg4[%c20, %c0_95, %c0_96] : memref<36x16x128xbf16, #tpu.memory_space<vmem>>, vector<1x16x128xbf16>
    %114 = vector.shape_cast %113 : vector<1x16x128xbf16> to vector<16x128xbf16>
    %cst_97 = arith.constant dense<0.000000e+00> : vector<8x128xf32>
    %115 = tpu.matmul %112, %114, %cst_97 {dimension_numbers = #tpu.dot_dimension_numbers<[1], [0], [0], [1], [0, 0, 1, 1], [], []>} : vector<8x16xbf16>, vector<16x128xbf16>, vector<8x128xf32> -> vector<8x128xf32>
    %116 = arith.addf %111, %115 : vector<8x128xf32>
    %c192 = arith.constant 192 : index
    %c0_98 = arith.constant 0 : index
    %117 = vector.load %arg12[%c192, %c0_98] : memref<392x16xbf16, #tpu.memory_space<vmem>>, vector<8x16xbf16>
    %c21 = arith.constant 21 : index
    %c0_99 = arith.constant 0 : index
    %c0_100 = arith.constant 0 : index
    %118 = vector.load %arg4[%c21, %c0_99, %c0_100] : memref<36x16x128xbf16, #tpu.memory_space<vmem>>, vector<1x16x128xbf16>
    %119 = vector.shape_cast %118 : vector<1x16x128xbf16> to vector<16x128xbf16>
    %cst_101 = arith.constant dense<0.000000e+00> : vector<8x128xf32>
    %120 = tpu.matmul %117, %119, %cst_101 {dimension_numbers = #tpu.dot_dimension_numbers<[1], [0], [0], [1], [0, 0, 1, 1], [], []>} : vector<8x16xbf16>, vector<16x128xbf16>, vector<8x128xf32> -> vector<8x128xf32>
    %121 = arith.addf %116, %120 : vector<8x128xf32>
    %c200 = arith.constant 200 : index
    %c0_102 = arith.constant 0 : index
    %122 = vector.load %arg12[%c200, %c0_102] : memref<392x16xbf16, #tpu.memory_space<vmem>>, vector<8x16xbf16>
    %c22 = arith.constant 22 : index
    %c0_103 = arith.constant 0 : index
    %c0_104 = arith.constant 0 : index
    %123 = vector.load %arg4[%c22, %c0_103, %c0_104] : memref<36x16x128xbf16, #tpu.memory_space<vmem>>, vector<1x16x128xbf16>
    %124 = vector.shape_cast %123 : vector<1x16x128xbf16> to vector<16x128xbf16>
    %cst_105 = arith.constant dense<0.000000e+00> : vector<8x128xf32>
    %125 = tpu.matmul %122, %124, %cst_105 {dimension_numbers = #tpu.dot_dimension_numbers<[1], [0], [0], [1], [0, 0, 1, 1], [], []>} : vector<8x16xbf16>, vector<16x128xbf16>, vector<8x128xf32> -> vector<8x128xf32>
    %126 = arith.addf %121, %125 : vector<8x128xf32>
    %c208 = arith.constant 208 : index
    %c0_106 = arith.constant 0 : index
    %127 = vector.load %arg12[%c208, %c0_106] : memref<392x16xbf16, #tpu.memory_space<vmem>>, vector<8x16xbf16>
    %c23 = arith.constant 23 : index
    %c0_107 = arith.constant 0 : index
    %c0_108 = arith.constant 0 : index
    %128 = vector.load %arg4[%c23, %c0_107, %c0_108] : memref<36x16x128xbf16, #tpu.memory_space<vmem>>, vector<1x16x128xbf16>
    %129 = vector.shape_cast %128 : vector<1x16x128xbf16> to vector<16x128xbf16>
    %cst_109 = arith.constant dense<0.000000e+00> : vector<8x128xf32>
    %130 = tpu.matmul %127, %129, %cst_109 {dimension_numbers = #tpu.dot_dimension_numbers<[1], [0], [0], [1], [0, 0, 1, 1], [], []>} : vector<8x16xbf16>, vector<16x128xbf16>, vector<8x128xf32> -> vector<8x128xf32>
    %131 = arith.addf %126, %130 : vector<8x128xf32>
    %c224 = arith.constant 224 : index
    %c0_110 = arith.constant 0 : index
    %132 = vector.load %arg12[%c224, %c0_110] : memref<392x16xbf16, #tpu.memory_space<vmem>>, vector<8x16xbf16>
    %c24_111 = arith.constant 24 : index
    %c0_112 = arith.constant 0 : index
    %c0_113 = arith.constant 0 : index
    %133 = vector.load %arg4[%c24_111, %c0_112, %c0_113] : memref<36x16x128xbf16, #tpu.memory_space<vmem>>, vector<1x16x128xbf16>
    %134 = vector.shape_cast %133 : vector<1x16x128xbf16> to vector<16x128xbf16>
    %cst_114 = arith.constant dense<0.000000e+00> : vector<8x128xf32>
    %135 = tpu.matmul %132, %134, %cst_114 {dimension_numbers = #tpu.dot_dimension_numbers<[1], [0], [0], [1], [0, 0, 1, 1], [], []>} : vector<8x16xbf16>, vector<16x128xbf16>, vector<8x128xf32> -> vector<8x128xf32>
    %136 = arith.addf %131, %135 : vector<8x128xf32>
    %c232 = arith.constant 232 : index
    %c0_115 = arith.constant 0 : index
    %137 = vector.load %arg12[%c232, %c0_115] : memref<392x16xbf16, #tpu.memory_space<vmem>>, vector<8x16xbf16>
    %c25 = arith.constant 25 : index
    %c0_116 = arith.constant 0 : index
    %c0_117 = arith.constant 0 : index
    %138 = vector.load %arg4[%c25, %c0_116, %c0_117] : memref<36x16x128xbf16, #tpu.memory_space<vmem>>, vector<1x16x128xbf16>
    %139 = vector.shape_cast %138 : vector<1x16x128xbf16> to vector<16x128xbf16>
    %cst_118 = arith.constant dense<0.000000e+00> : vector<8x128xf32>
    %140 = tpu.matmul %137, %139, %cst_118 {dimension_numbers = #tpu.dot_dimension_numbers<[1], [0], [0], [1], [0, 0, 1, 1], [], []>} : vector<8x16xbf16>, vector<16x128xbf16>, vector<8x128xf32> -> vector<8x128xf32>
    %141 = arith.addf %136, %140 : vector<8x128xf32>
    %c240 = arith.constant 240 : index
    %c0_119 = arith.constant 0 : index
    %142 = vector.load %arg12[%c240, %c0_119] : memref<392x16xbf16, #tpu.memory_space<vmem>>, vector<8x16xbf16>
    %c26 = arith.constant 26 : index
    %c0_120 = arith.constant 0 : index
    %c0_121 = arith.constant 0 : index
    %143 = vector.load %arg4[%c26, %c0_120, %c0_121] : memref<36x16x128xbf16, #tpu.memory_space<vmem>>, vector<1x16x128xbf16>
    %144 = vector.shape_cast %143 : vector<1x16x128xbf16> to vector<16x128xbf16>
    %cst_122 = arith.constant dense<0.000000e+00> : vector<8x128xf32>
    %145 = tpu.matmul %142, %144, %cst_122 {dimension_numbers = #tpu.dot_dimension_numbers<[1], [0], [0], [1], [0, 0, 1, 1], [], []>} : vector<8x16xbf16>, vector<16x128xbf16>, vector<8x128xf32> -> vector<8x128xf32>
    %146 = arith.addf %141, %145 : vector<8x128xf32>
    %c248 = arith.constant 248 : index
    %c0_123 = arith.constant 0 : index
    %147 = vector.load %arg12[%c248, %c0_123] : memref<392x16xbf16, #tpu.memory_space<vmem>>, vector<8x16xbf16>
    %c27 = arith.constant 27 : index
    %c0_124 = arith.constant 0 : index
    %c0_125 = arith.constant 0 : index
    %148 = vector.load %arg4[%c27, %c0_124, %c0_125] : memref<36x16x128xbf16, #tpu.memory_space<vmem>>, vector<1x16x128xbf16>
    %149 = vector.shape_cast %148 : vector<1x16x128xbf16> to vector<16x128xbf16>
    %cst_126 = arith.constant dense<0.000000e+00> : vector<8x128xf32>
    %150 = tpu.matmul %147, %149, %cst_126 {dimension_numbers = #tpu.dot_dimension_numbers<[1], [0], [0], [1], [0, 0, 1, 1], [], []>} : vector<8x16xbf16>, vector<16x128xbf16>, vector<8x128xf32> -> vector<8x128xf32>
    %151 = arith.addf %146, %150 : vector<8x128xf32>
    %c256 = arith.constant 256 : index
    %c0_127 = arith.constant 0 : index
    %152 = vector.load %arg12[%c256, %c0_127] : memref<392x16xbf16, #tpu.memory_space<vmem>>, vector<8x16xbf16>
    %c28 = arith.constant 28 : index
    %c0_128 = arith.constant 0 : index
    %c0_129 = arith.constant 0 : index
    %153 = vector.load %arg4[%c28, %c0_128, %c0_129] : memref<36x16x128xbf16, #tpu.memory_space<vmem>>, vector<1x16x128xbf16>
    %154 = vector.shape_cast %153 : vector<1x16x128xbf16> to vector<16x128xbf16>
    %cst_130 = arith.constant dense<0.000000e+00> : vector<8x128xf32>
    %155 = tpu.matmul %152, %154, %cst_130 {dimension_numbers = #tpu.dot_dimension_numbers<[1], [0], [0], [1], [0, 0, 1, 1], [], []>} : vector<8x16xbf16>, vector<16x128xbf16>, vector<8x128xf32> -> vector<8x128xf32>
    %156 = arith.addf %151, %155 : vector<8x128xf32>
    %c264 = arith.constant 264 : index
    %c0_131 = arith.constant 0 : index
    %157 = vector.load %arg12[%c264, %c0_131] : memref<392x16xbf16, #tpu.memory_space<vmem>>, vector<8x16xbf16>
    %c29 = arith.constant 29 : index
    %c0_132 = arith.constant 0 : index
    %c0_133 = arith.constant 0 : index
    %158 = vector.load %arg4[%c29, %c0_132, %c0_133] : memref<36x16x128xbf16, #tpu.memory_space<vmem>>, vector<1x16x128xbf16>
    %159 = vector.shape_cast %158 : vector<1x16x128xbf16> to vector<16x128xbf16>
    %cst_134 = arith.constant dense<0.000000e+00> : vector<8x128xf32>
    %160 = tpu.matmul %157, %159, %cst_134 {dimension_numbers = #tpu.dot_dimension_numbers<[1], [0], [0], [1], [0, 0, 1, 1], [], []>} : vector<8x16xbf16>, vector<16x128xbf16>, vector<8x128xf32> -> vector<8x128xf32>
    %161 = arith.addf %156, %160 : vector<8x128xf32>
    %c280 = arith.constant 280 : index
    %c0_135 = arith.constant 0 : index
    %162 = vector.load %arg12[%c280, %c0_135] : memref<392x16xbf16, #tpu.memory_space<vmem>>, vector<8x16xbf16>
    %c30 = arith.constant 30 : index
    %c0_136 = arith.constant 0 : index
    %c0_137 = arith.constant 0 : index
    %163 = vector.load %arg4[%c30, %c0_136, %c0_137] : memref<36x16x128xbf16, #tpu.memory_space<vmem>>, vector<1x16x128xbf16>
    %164 = vector.shape_cast %163 : vector<1x16x128xbf16> to vector<16x128xbf16>
    %cst_138 = arith.constant dense<0.000000e+00> : vector<8x128xf32>
    %165 = tpu.matmul %162, %164, %cst_138 {dimension_numbers = #tpu.dot_dimension_numbers<[1], [0], [0], [1], [0, 0, 1, 1], [], []>} : vector<8x16xbf16>, vector<16x128xbf16>, vector<8x128xf32> -> vector<8x128xf32>
    %166 = arith.addf %161, %165 : vector<8x128xf32>
    %c288 = arith.constant 288 : index
    %c0_139 = arith.constant 0 : index
    %167 = vector.load %arg12[%c288, %c0_139] : memref<392x16xbf16, #tpu.memory_space<vmem>>, vector<8x16xbf16>
    %c31 = arith.constant 31 : index
    %c0_140 = arith.constant 0 : index
    %c0_141 = arith.constant 0 : index
    %168 = vector.load %arg4[%c31, %c0_140, %c0_141] : memref<36x16x128xbf16, #tpu.memory_space<vmem>>, vector<1x16x128xbf16>
    %169 = vector.shape_cast %168 : vector<1x16x128xbf16> to vector<16x128xbf16>
    %cst_142 = arith.constant dense<0.000000e+00> : vector<8x128xf32>
    %170 = tpu.matmul %167, %169, %cst_142 {dimension_numbers = #tpu.dot_dimension_numbers<[1], [0], [0], [1], [0, 0, 1, 1], [], []>} : vector<8x16xbf16>, vector<16x128xbf16>, vector<8x128xf32> -> vector<8x128xf32>
    %171 = arith.addf %166, %170 : vector<8x128xf32>
    %c296 = arith.constant 296 : index
    %c0_143 = arith.constant 0 : index
    %172 = vector.load %arg12[%c296, %c0_143] : memref<392x16xbf16, #tpu.memory_space<vmem>>, vector<8x16xbf16>
    %c32_144 = arith.constant 32 : index
    %c0_145 = arith.constant 0 : index
    %c0_146 = arith.constant 0 : index
    %173 = vector.load %arg4[%c32_144, %c0_145, %c0_146] : memref<36x16x128xbf16, #tpu.memory_space<vmem>>, vector<1x16x128xbf16>
    %174 = vector.shape_cast %173 : vector<1x16x128xbf16> to vector<16x128xbf16>
    %cst_147 = arith.constant dense<0.000000e+00> : vector<8x128xf32>
    %175 = tpu.matmul %172, %174, %cst_147 {dimension_numbers = #tpu.dot_dimension_numbers<[1], [0], [0], [1], [0, 0, 1, 1], [], []>} : vector<8x16xbf16>, vector<16x128xbf16>, vector<8x128xf32> -> vector<8x128xf32>
    %176 = arith.addf %171, %175 : vector<8x128xf32>
    %c304 = arith.constant 304 : index
    %c0_148 = arith.constant 0 : index
    %177 = vector.load %arg12[%c304, %c0_148] : memref<392x16xbf16, #tpu.memory_space<vmem>>, vector<8x16xbf16>
    %c33 = arith.constant 33 : index
    %c0_149 = arith.constant 0 : index
    %c0_150 = arith.constant 0 : index
    %178 = vector.load %arg4[%c33, %c0_149, %c0_150] : memref<36x16x128xbf16, #tpu.memory_space<vmem>>, vector<1x16x128xbf16>
    %179 = vector.shape_cast %178 : vector<1x16x128xbf16> to vector<16x128xbf16>
    %cst_151 = arith.constant dense<0.000000e+00> : vector<8x128xf32>
    %180 = tpu.matmul %177, %179, %cst_151 {dimension_numbers = #tpu.dot_dimension_numbers<[1], [0], [0], [1], [0, 0, 1, 1], [], []>} : vector<8x16xbf16>, vector<16x128xbf16>, vector<8x128xf32> -> vector<8x128xf32>
    %181 = arith.addf %176, %180 : vector<8x128xf32>
    %c312 = arith.constant 312 : index
    %c0_152 = arith.constant 0 : index
    %182 = vector.load %arg12[%c312, %c0_152] : memref<392x16xbf16, #tpu.memory_space<vmem>>, vector<8x16xbf16>
    %c34 = arith.constant 34 : index
    %c0_153 = arith.constant 0 : index
    %c0_154 = arith.constant 0 : index
    %183 = vector.load %arg4[%c34, %c0_153, %c0_154] : memref<36x16x128xbf16, #tpu.memory_space<vmem>>, vector<1x16x128xbf16>
    %184 = vector.shape_cast %183 : vector<1x16x128xbf16> to vector<16x128xbf16>
    %cst_155 = arith.constant dense<0.000000e+00> : vector<8x128xf32>
    %185 = tpu.matmul %182, %184, %cst_155 {dimension_numbers = #tpu.dot_dimension_numbers<[1], [0], [0], [1], [0, 0, 1, 1], [], []>} : vector<8x16xbf16>, vector<16x128xbf16>, vector<8x128xf32> -> vector<8x128xf32>
    %186 = arith.addf %181, %185 : vector<8x128xf32>
    %c320 = arith.constant 320 : index
    %c0_156 = arith.constant 0 : index
    %187 = vector.load %arg12[%c320, %c0_156] : memref<392x16xbf16, #tpu.memory_space<vmem>>, vector<8x16xbf16>
    %c35 = arith.constant 35 : index
    %c0_157 = arith.constant 0 : index
    %c0_158 = arith.constant 0 : index
    %188 = vector.load %arg4[%c35, %c0_157, %c0_158] : memref<36x16x128xbf16, #tpu.memory_space<vmem>>, vector<1x16x128xbf16>
    %189 = vector.shape_cast %188 : vector<1x16x128xbf16> to vector<16x128xbf16>
    %cst_159 = arith.constant dense<0.000000e+00> : vector<8x128xf32>
    %190 = tpu.matmul %187, %189, %cst_159 {dimension_numbers = #tpu.dot_dimension_numbers<[1], [0], [0], [1], [0, 0, 1, 1], [], []>} : vector<8x16xbf16>, vector<16x128xbf16>, vector<8x128xf32> -> vector<8x128xf32>
    %191 = arith.addf %186, %190 : vector<8x128xf32>
    %c0_160 = arith.constant 0 : index
    %c0_161 = arith.constant 0 : index
    %192 = vector.load %arg5[%c0_160, %c0_161] : memref<1x128xf32, #tpu.memory_space<vmem>>, vector<1x128xf32>
    %193 = vector.broadcast %192 : vector<1x128xf32> to vector<8x128xf32>
    %194 = arith.addf %191, %193 : vector<8x128xf32>
    %cst_162 = arith.constant 0.000000e+00 : f32
    %195 = vector.broadcast %cst_162 : f32 to vector<8x128xf32>
    %196 = arith.maximumf %194, %195 : vector<8x128xf32>
    %197 = arith.truncf %196 : vector<8x128xf32> to vector<8x128xbf16>
    %c0_163 = arith.constant 0 : index
    %c0_164 = arith.constant 0 : index
    %198 = vector.load %arg6[%c0_163, %c0_164] : memref<128x256xbf16, #tpu.memory_space<vmem>>, vector<128x256xbf16>
    %cst_165 = arith.constant dense<0.000000e+00> : vector<8x256xf32>
    %199 = tpu.matmul %197, %198, %cst_165 {dimension_numbers = #tpu.dot_dimension_numbers<[1], [0], [0], [1], [0, 0, 1, 1], [], []>} : vector<8x128xbf16>, vector<128x256xbf16>, vector<8x256xf32> -> vector<8x256xf32>
    %c0_166 = arith.constant 0 : index
    %c0_167 = arith.constant 0 : index
    %200 = vector.load %arg7[%c0_166, %c0_167] : memref<1x256xf32, #tpu.memory_space<vmem>>, vector<1x256xf32>
    %201 = vector.broadcast %200 : vector<1x256xf32> to vector<8x256xf32>
    %202 = arith.addf %199, %201 : vector<8x256xf32>
    %c0_168 = arith.constant 0 : index
    %c0_169 = arith.constant 0 : index
    %203 = vector.load %arg10[%c0_168, %c0_169] : memref<8x256xf32, #tpu.memory_space<vmem>>, vector<8x256xf32>
    tpu.vector_store %arg10[%c0_168, %c0_169], %202 {strides = array<i32>} : memref<8x256xf32, #tpu.memory_space<vmem>>, vector<8x256xf32>,
    %cst_170 = arith.constant 0.000000e+00 : f32
    %204 = vector.broadcast %cst_170 : f32 to vector<8x256xf32>
    %205 = arith.maximumf %202, %204 : vector<8x256xf32>
    %206 = arith.truncf %205 : vector<8x256xf32> to vector<8x256xbf16>
    %c0_171 = arith.constant 0 : index
    %c0_172 = arith.constant 0 : index
    %207 = vector.load %arg8[%c0_171, %c0_172] : memref<256x128xbf16, #tpu.memory_space<vmem>>, vector<256x128xbf16>
    %cst_173 = arith.constant dense<0.000000e+00> : vector<8x128xf32>
    %208 = tpu.matmul %206, %207, %cst_173 {dimension_numbers = #tpu.dot_dimension_numbers<[1], [0], [0], [1], [0, 0, 1, 1], [], []>} : vector<8x256xbf16>, vector<256x128xbf16>, vector<8x128xf32> -> vector<8x128xf32>
    %c0_174 = arith.constant 0 : index
    %c0_175 = arith.constant 0 : index
    %209 = vector.load %arg9[%c0_174, %c0_175] : memref<1x128xf32, #tpu.memory_space<vmem>>, vector<1x128xf32>
    %210 = vector.broadcast %209 : vector<1x128xf32> to vector<8x128xf32>
    %211 = arith.addf %208, %210 : vector<8x128xf32>
    %c0_176 = arith.constant 0 : index
    %c0_177 = arith.constant 0 : index
    %212 = vector.load %arg11[%c0_176, %c0_177] : memref<8x128xf32, #tpu.memory_space<vmem>>, vector<8x128xf32>
    tpu.vector_store %arg11[%c0_176, %c0_177], %211 {strides = array<i32>} : memref<8x128xf32, #tpu.memory_space<vmem>>, vector<8x128xf32>,
    return
  }
  func.func @transform_0(%arg0: i32) -> (i32, i32, i32) {
    %c0_i32 = arith.constant 0 : i32
    %c0_i32_0 = arith.constant 0 : i32
    %c0_i32_1 = arith.constant 0 : i32
    return %arg0, %c0_i32, %c0_i32_0 : i32, i32, i32
  }
  func.func @transform_1(%arg0: i32) -> (i32, i32) {
    %c0_i32 = arith.constant 0 : i32
    %c0_i32_0 = arith.constant 0 : i32
    %c0_i32_1 = arith.constant 0 : i32
    return %c0_i32, %c0_i32_0 : i32, i32
  }
  func.func @transform_2(%arg0: i32) -> (i32, i32) {
    %c0_i32 = arith.constant 0 : i32
    %c0_i32_0 = arith.constant 0 : i32
    %c0_i32_1 = arith.constant 0 : i32
    return %c0_i32, %c0_i32_0 : i32, i32
  }
  func.func @transform_3(%arg0: i32) -> (i32, i32, i32) {
    %c0_i32 = arith.constant 0 : i32
    %c0_i32_0 = arith.constant 0 : i32
    %c0_i32_1 = arith.constant 0 : i32
    %c0_i32_2 = arith.constant 0 : i32
    return %c0_i32, %c0_i32_0, %c0_i32_1 : i32, i32, i32
  }
  func.func @transform_4(%arg0: i32) -> (i32, i32) {
    %c0_i32 = arith.constant 0 : i32
    %c0_i32_0 = arith.constant 0 : i32
    %c0_i32_1 = arith.constant 0 : i32
    return %c0_i32, %c0_i32_0 : i32, i32
  }
  func.func @transform_5(%arg0: i32) -> (i32, i32) {
    %c0_i32 = arith.constant 0 : i32
    %c0_i32_0 = arith.constant 0 : i32
    %c0_i32_1 = arith.constant 0 : i32
    return %c0_i32, %c0_i32_0 : i32, i32
  }
  func.func @transform_6(%arg0: i32) -> (i32, i32) {
    %c0_i32 = arith.constant 0 : i32
    %c0_i32_0 = arith.constant 0 : i32
    %c0_i32_1 = arith.constant 0 : i32
    return %c0_i32, %c0_i32_0 : i32, i32
  }
  func.func @transform_7(%arg0: i32) -> (i32, i32) {
    %c0_i32 = arith.constant 0 : i32
    %c0_i32_0 = arith.constant 0 : i32
    %c0_i32_1 = arith.constant 0 : i32
    return %c0_i32, %c0_i32_0 : i32, i32
  }
  func.func @transform_8(%arg0: i32) -> (i32, i32) {
    %c0_i32 = arith.constant 0 : i32
    %c0_i32_0 = arith.constant 0 : i32
    %c0_i32_1 = arith.constant 0 : i32
    return %c0_i32, %c0_i32_0 : i32, i32
  }
  func.func @transform_9(%arg0: i32) -> (i32, i32) {
    %c0_i32 = arith.constant 0 : i32
    %c0_i32_0 = arith.constant 0 : i32
    return %arg0, %c0_i32 : i32, i32
  }
  func.func @transform_10(%arg0: i32) -> (i32, i32) {
    %c0_i32 = arith.constant 0 : i32
    %c0_i32_0 = arith.constant 0 : i32
    return %arg0, %c0_i32 : i32, i32
  }
}

</mosaic_0001>

<bundles_post_ra>
// kernel: deep_q_network_forward.1
= control target key start
LH: loop header
LB: loop body
LE: loop exit
PB: predicated region body
PF: predicated region fallthrough
CT: control target
= control target key end

     0   :  { %v4106_v0 = vmov 0   ;;  %v4107_v44 = vmov 0.0   ;;  %vm4108_vm0 = vmmov 0   ;;  %vm944_vm1 = vcmask 125952   ;;  %s4825_s1 = inlined_call_operand.vmem [shape: bf16[256,16], index: 1, kind: input, shape index: {}]   ;;  %s4826_s0 = inlined_call_operand.vmem [shape: bf16[1,392,256], index: 0, kind: input, shape index: {}]   ;;  %s4827_s3 = inlined_call_operand.vmem [shape: bf16[36,16,128], index: 3, kind: input, shape index: {}]   ;;  %s4828_s2 = inlined_call_operand.vmem [shape: f32[1,16], index: 2, kind: input, shape index: {}]   ;;  %s4829_s5 = inlined_call_operand.vmem [shape: bf16[128,256], index: 5, kind: input, shape index: {}]   ;;  %s4830_s7 = inlined_call_operand.vmem [shape: bf16[256,128], index: 7, kind: input, shape index: {}]   ;;  %s4831_s4 = inlined_call_operand.vmem [shape: f32[1,128], index: 4, kind: input, shape index: {}]   ;;  %s4832_s6 = inlined_call_operand.vmem [shape: f32[1,256], index: 6, kind: input, shape index: {}]   ;;  %s4833_s9 = inlined_call_operand.vmem [shape: f32[8,256], index: 9, kind: output, shape index: {0}]   ;;  %s4834_s8 = inlined_call_operand.vmem [shape: f32[1,128], index: 8, kind: input, shape index: {}]   ;;  %s4835_s10 = inlined_call_operand.vmem [shape: f32[8,128], index: 10, kind: output, shape index: {1}]  }
   0x1   :  { %466 = vmatprep.subr.bf16.mxu0 %v4106_v0  ;;  %v3939_v1 = vld [vmem:[%s4825_s1] sm:$0xff]   ;;  %v3940_v2 = vld [vmem:[%s4825_s1 + $0x8] sm:$0xff]   ;;  %v3941_v3 = vld [vmem:[%s4825_s1 + $0x10] sm:$0xff]   ;;  %3720 = vmatprep.subr.bf16.mxu1 %v4107_v44  ;;  %vm1007_vm2 = vcmask 130048  }
   0x2   :  { %467 = vmatpush1.bf16.msra.mxu0 %v3939_v1  ;;  %v3942_v4 = vld [vmem:[%s4825_s1 + $0x18] sm:$0xff]   ;;  %v3943_v5 = vld [vmem:[%s4825_s1 + $0x20] sm:$0xff]   ;;  %v3944_v7 = vld [vmem:[%s4825_s1 + $0x28] sm:$0xff]   ;;  %3722 = vmatprep.mubr.msk.bf16.mxu1 %vm4108_vm0, %v4107_v44 }
   0x3   :  { %468 = vmatprep.subr.bf16.mxu0 %v4106_v0  ;;  %v3957_v6 = vld [vmem:[%s4826_s0 + $0x4] ss:$8 sps:$4 sm:$0xff]   ;;  %v3945_v8 = vld [vmem:[%s4825_s1 + $0x30] sm:$0xff]   ;;  %v3946_v9 = vld [vmem:[%s4825_s1 + $0x38] sm:$0xff]  }
   0x4   :  { %498 = vmatprep.mubr.bf16.mxu0 %v3957_v6  ;;  %v3947_v10 = vld [vmem:[%s4825_s1 + $0x40] sm:$0xff]   ;;  %v3948_v11 = vld [vmem:[%s4825_s1 + $0x48] sm:$0xff]   ;;  %v3949_v12 = vld [vmem:[%s4825_s1 + $0x50] sm:$0xff]  }
   0x5   :  { %v3950_v13 = vld [vmem:[%s4825_s1 + $0x58] sm:$0xff]   ;;  %v3951_v14 = vld [vmem:[%s4825_s1 + $0x60] sm:$0xff]   ;;  %v3952_v15 = vld [vmem:[%s4825_s1 + $0x68] sm:$0xff]  }
   0x6   :  { %469 = vmatpush1.bf16.msra.mxu0 %v3940_v2  ;;  %v3953_v16 = vld [vmem:[%s4825_s1 + $0x70] sm:$0xff]   ;;  %v3954_v17 = vld [vmem:[%s4825_s1 + $0x78] sm:$0xff]   ;;  %v3955_v18 = vld [vmem:[%s4826_s0] ss:$8 sps:$4 sm:$0xff]  }
   0x7   :  { %470 = vmatprep.subr.bf16.mxu0 %v4106_v0  ;;  %v3958_v19 = vld [vmem:[%s4826_s0 + $0x14] ss:$8 sps:$4 sm:$0xff]   ;;  %v3960_v20 = vld [vmem:[%s4826_s0 + $0x10] ss:$8 sps:$4 sm:$0xff]   ;;  %v3961_v21 = vld [vmem:[%s4826_s0 + $0x24] ss:$8 sps:$4 sm:$0xff]  }
   0x8   :  { %v3963_v22 = vld [vmem:[%s4826_s0 + $0x20] ss:$8 sps:$4 sm:$0xff]   ;;  %v3964_v23 = vld [vmem:[%s4826_s0 + $0x34] ss:$8 sps:$4 sm:$0xff]   ;;  %v3966_v24 = vld [vmem:[%s4826_s0 + $0x30] ss:$8 sps:$4 sm:$0xff]  }
   0x9   :  { %v3967_v25 = vld [vmem:[%s4826_s0 + $0x44] ss:$8 sps:$4 sm:$0xff]   ;;  %v3969_v26 = vld [vmem:[%s4826_s0 + $0x40] ss:$8 sps:$4 sm:$0xff]   ;;  %v3970_v27 = vld [vmem:[%s4826_s0 + $0x54] ss:$8 sps:$4 sm:$0xff]  }
   0xa   :  { %471 = vmatpush1.bf16.msra.mxu0 %v3941_v3  ;;  %v3972_v28 = vld [vmem:[%s4826_s0 + $0x50] ss:$8 sps:$4 sm:$0xff]   ;;  %v3973_v29 = vld [vmem:[%s4826_s0 + $0x64] ss:$8 sps:$4 sm:$0xff]   ;;  %v3975_v30 = vld [vmem:[%s4826_s0 + $0x60] ss:$8 sps:$4 sm:$0xff]  }
   0xb   :  { %472 = vmatprep.subr.bf16.mxu0 %v4106_v0  ;;  %v3976_v31 = vld [vmem:[%s4826_s0 + $0x74] ss:$8 sps:$4 sm:$0xff]   ;;  %v3978_v32 = vld [vmem:[%s4826_s0 + $0x70] ss:$8 sps:$4 sm:$0xff]   ;;  %v3979_v33 = vld [vmem:[%s4826_s0 + $0x84] ss:$8 sps:$4 sm:$0xff]  }
   0xc   :  { %v3981_v34 = vld [vmem:[%s4826_s0 + $0x80] ss:$8 sps:$4 sm:$0xff]   ;;  %v3982_v35 = vld [vmem:[%s4826_s0 + $0x94] ss:$8 sps:$4 sm:$0xff]   ;;  %v3984_v36 = vld [vmem:[%s4826_s0 + $0x90] ss:$8 sps:$4 sm:$0xff]  }
   0xd   :  { %v3985_v37 = vld [vmem:[%s4826_s0 + $0xa4] ss:$8 sps:$4 sm:$0xff]   ;;  %v3987_v38 = vld [vmem:[%s4826_s0 + $0xa0] ss:$8 sps:$4 sm:$0xff]   ;;  %v3988_v39 = vld [vmem:[%s4826_s0 + $0xb4] ss:$8 sps:$4 sm:$0xff]  }
   0xe   :  { %473 = vmatpush1.bf16.msra.mxu0 %v3942_v4  ;;  %v3990_v40 = vld [vmem:[%s4826_s0 + $0xb0] ss:$8 sps:$4 sm:$0xff]   ;;  %v3991_v41 = vld [vmem:[%s4826_s0 + $0xc4] ss:$8 sps:$4 sm:$0xff]   ;;  %v3993_v42 = vld [vmem:[%s4826_s0 + $0xc0] ss:$8 sps:$4 sm:$0xff]  }
   0xf   :  { %474 = vmatprep.subr.bf16.mxu0 %v4106_v0  ;;  %v3994_v43 = vld [vmem:[%s4826_s0 + $0xd4] ss:$8 sps:$4 sm:$0xff]   ;;  %v4006_v45 = vld [vmem:[%s4827_s3 + $0x8] sm:$0xff]   ;;  %v3996_v46 = vld [vmem:[%s4826_s0 + $0xd0] ss:$8 sps:$4 sm:$0xff]  }
  0x10   :  { %3721 = vmatpush3.bf16.msra.mxu1 %v4006_v45  ;;  %v3997_v47 = vld [vmem:[%s4826_s0 + $0xe4] ss:$8 sps:$4 sm:$0xff]   ;;  %v3999_v48 = vld [vmem:[%s4826_s0 + $0xe0] ss:$8 sps:$4 sm:$0xff]   ;;  %v4000_v49 = vld [vmem:[%s4826_s0 + $0xf4] ss:$8 sps:$4 sm:$0xff]  }
  0x11   :  { %3726 = vmatprep.subr.bf16.mxu1 %v4107_v44  ;;  %v4002_v50 = vld [vmem:[%s4826_s0 + $0xf0] ss:$8 sps:$4 sm:$0xff]   ;;  %v4003_v51 = vld [vmem:[%s4826_s0 + $0x104] ss:$8 sps:$4 sm:$0xff]   ;;  %v4005_v52 = vld [vmem:[%s4826_s0 + $0x100] ss:$8 sps:$4 sm:$0xff]  }
  0x12   :  { %475 = vmatpush1.bf16.msra.mxu0 %v3943_v5  ;;  %v4008_v53 = vld [vmem:[%s4826_s0 + $0x114] ss:$8 sps:$4 sm:$0xff]   ;;  %v4011_v54 = vld [vmem:[%s4826_s0 + $0x110] ss:$8 sps:$4 sm:$0xff]   ;;  %v4013_v55 = vld [vmem:[%s4826_s0 + $0x124] ss:$8 sps:$4 sm:$0xff]  }
  0x13   :  { %476 = vmatprep.subr.bf16.mxu0 %v4106_v0  ;;  %v4015_v56 = vld [vmem:[%s4826_s0 + $0x120] ss:$8 sps:$4 sm:$0xff]   ;;  %v4017_v57 = vld [vmem:[%s4826_s0 + $0x134] ss:$8 sps:$4 sm:$0xff]   ;;  %v4019_v58 = vld [vmem:[%s4826_s0 + $0x130] ss:$8 sps:$4 sm:$0xff]  }
  0x14   :  { %v4021_v59 = vld [vmem:[%s4826_s0 + $0x144] ss:$8 sps:$4 sm:$0xff]   ;;  %v4023_v60 = vld [vmem:[%s4826_s0 + $0x140] ss:$8 sps:$4 sm:$0xff]  }
  0x15   :  { %v4027_v61 = vld [vmem:[%s4827_s3 + $0x108] sm:$0xff]   ;;  %v4369_v62 = vld [vmem:[%s4828_s2] ss:$0 sm:$0xff] }
  0x16   :  { %477 = vmatpush1.bf16.msra.mxu0 %v3944_v7 }
  0x17   :  { %478 = vmatprep.subr.bf16.mxu0 %v4106_v0 }
  0x1a   :  { %479 = vmatpush1.bf16.msra.mxu0 %v3945_v8 }
  0x1b   :  { %480 = vmatprep.subr.bf16.mxu0 %v4106_v0 }
  0x1e   :  { %481 = vmatpush1.bf16.msra.mxu0 %v3946_v9 }
  0x1f   :  { %482 = vmatprep.subr.bf16.mxu0 %v4106_v0 }
  0x22   :  { %483 = vmatpush1.bf16.msra.mxu0 %v3947_v10 }
  0x23   :  { %484 = vmatprep.subr.bf16.mxu0 %v4106_v0 }
  0x26   :  { %485 = vmatpush1.bf16.msra.mxu0 %v3948_v11 }
  0x27   :  { %486 = vmatprep.subr.bf16.mxu0 %v4106_v0 }
  0x2a   :  { %487 = vmatpush1.bf16.msra.mxu0 %v3949_v12 }
  0x2b   :  { %488 = vmatprep.subr.bf16.mxu0 %v4106_v0 }
  0x2e   :  { %489 = vmatpush1.bf16.msra.mxu0 %v3950_v13 }
  0x2f   :  { %490 = vmatprep.subr.bf16.mxu0 %v4106_v0 }
  0x32   :  { %491 = vmatpush1.bf16.msra.mxu0 %v3951_v14 }
  0x33   :  { %492 = vmatprep.subr.bf16.mxu0 %v4106_v0 }
  0x36   :  { %493 = vmatpush1.bf16.msra.mxu0 %v3952_v15 }
  0x37   :  { %494 = vmatprep.subr.bf16.mxu0 %v4106_v0 }
  0x3a   :  { %495 = vmatpush1.bf16.msra.mxu0 %v3953_v16 }
  0x3b   :  { %496 = vmatprep.subr.bf16.mxu0 %v4106_v0 }
  0x3e   :  { %497 = vmatpush1.bf16.msra.mxu0 %v3954_v17 }
  0x3f   :  { %3918 = vmatprep.subr.bf16.mxu0 %v4107_v44 }
  0x41   :  { %499 = vmatmul.mubr.bf16.vlgmr.msra.gmra.mrb[0].mxu0 %v3955_v18 }
  0x42   :  { %506 = vmatprep.mubr.bf16.mxu0 %v3958_v19  ;;  %3919 = vmatpush3.bf16.msra.mxu0 %v4027_v61  ;;  %v4007_v19 = vld [vmem:[%s4827_s3] sm:$0xff]  }
  0x43   :  { %3930 = vmatprep.subr.bf16.mxu0 %v4107_v44 }
  0x49   :  { %507 = vmatmul.mubr.bf16.gmra.mrb[4].mxu0 %v3960_v20 }
  0x4a   :  { %514 = vmatprep.mubr.bf16.mxu0 %v3961_v21 }
  0x51   :  { %515 = vmatmul.mubr.bf16.gmra.mrb[8].mxu0 %v3963_v22 }
  0x52   :  { %522 = vmatprep.mubr.bf16.mxu0 %v3964_v23 }
  0x59   :  { %523 = vmatmul.mubr.bf16.gmra.mrb[12].mxu0 %v3966_v24 }
  0x5a   :  { %530 = vmatprep.mubr.bf16.mxu0 %v3967_v25 }
  0x61   :  { %531 = vmatmul.mubr.bf16.gmra.mrb[16].mxu0 %v3969_v26 }
  0x62   :  { %538 = vmatprep.mubr.bf16.mxu0 %v3970_v27 }
  0x69   :  { %539 = vmatmul.mubr.bf16.gmra.mrb[20].mxu0 %v3972_v28 }
  0x6a   :  { %546 = vmatprep.mubr.bf16.mxu0 %v3973_v29 }
  0x71   :  { %547 = vmatmul.mubr.bf16.gmra.mrb[24].mxu0 %v3975_v30 }
  0x72   :  { %554 = vmatprep.mubr.bf16.mxu0 %v3976_v31  ;;  %v4010_v31 = vld [vmem:[%s4827_s3 + $0x10] sm:$0xff]  }
  0x79   :  { %555 = vmatmul.mubr.bf16.gmra.mrb[28].mxu0 %v3978_v32 }
  0x7a   :  { %562 = vmatprep.mubr.bf16.mxu0 %v3979_v33 }
  0x81   :  { %563 = vmatmul.mubr.bf16.gmra.mrb[32].mxu0 %v3981_v34 }
  0x82   :  { %570 = vmatprep.mubr.bf16.mxu0 %v3982_v35 }
  0x89   :  { %571 = vmatmul.mubr.bf16.gmra.mrb[36].mxu0 %v3984_v36 }
  0x8a   :  { %578 = vmatprep.mubr.bf16.mxu0 %v3985_v37 }
  0x91   :  { %579 = vmatmul.mubr.bf16.gmra.mrb[40].mxu0 %v3987_v38 }
  0x92   :  { %586 = vmatprep.mubr.bf16.mxu0 %v3988_v39 }
  0x99   :  { %587 = vmatmul.mubr.bf16.gmra.mrb[44].mxu0 %v3990_v40 }
  0x9a   :  { %594 = vmatprep.mubr.bf16.mxu0 %v3991_v41  ;;  %v4012_v41 = vld [vmem:[%s4827_s3 + $0x18] sm:$0xff]  }
  0xa1   :  { %595 = vmatmul.mubr.bf16.gmra.mrb[48].mxu0 %v3993_v42 }
  0xa2   :  { %602 = vmatprep.mubr.bf16.mxu0 %v3994_v43 }
  0xa9   :  { %603 = vmatmul.mubr.bf16.gmra.mrb[52].mxu0 %v3996_v46 }
  0xaa   :  { %610 = vmatprep.mubr.bf16.mxu0 %v3997_v47 }
  0xb1   :  { %611 = vmatmul.mubr.bf16.gmra.mrb[56].mxu0 %v3999_v48 }
  0xb2   :  { %618 = vmatprep.mubr.bf16.mxu0 %v4000_v49 }
  0xb9   :  { %619 = vmatmul.mubr.bf16.gmra.mrb[60].mxu0 %v4002_v50 }
  0xba   :  { %626 = vmatprep.mubr.bf16.mxu0 %v4003_v51 }
  0xc1   :  { %627 = vmatmul.mubr.bf16.gmra.mrb[64].mxu0 %v4005_v52 }
  0xc2   :  { %634 = vmatprep.mubr.bf16.mxu0 %v4008_v53  ;;  %v4016_v53 = vld [vmem:[%s4827_s3 + $0x20] sm:$0xff]  }
  0xc9   :  { %635 = vmatmul.mubr.bf16.gmra.mrb[68].mxu0 %v4011_v54 }
  0xca   :  { %642 = vmatprep.mubr.bf16.mxu0 %v4013_v55 }
  0xd1   :  { %643 = vmatmul.mubr.bf16.gmra.mrb[72].mxu0 %v4015_v56 }
  0xd2   :  { %650 = vmatprep.mubr.bf16.mxu0 %v4017_v57 }
  0xd9   :  { %651 = vmatmul.mubr.bf16.gmra.mrb[76].mxu0 %v4019_v58 }
  0xda   :  { %658 = vmatprep.mubr.bf16.mxu0 %v4021_v59 }
  0xe1   :  { %659 = vmatmul.mubr.bf16.gmra.mrb[80].mxu0 %v4023_v60 }
 0x114   :  { %v500_v63 = vpop.f32.mrb[0].mxu0 }
 0x115   :  { %v501_v1 = vadd.f32 %v4369_v62, %v500_v63  ;;  %v502_v2 = vpop.f32.mrb[1].mxu0 }
 0x116   :  { %v503_v3 = vpop.f32.mrb[2].mxu0 }
 0x117   :  { %v698_v4 = vmax.f32 %v501_v1, 0.0  ;;  %v504_v5 = vadd.f32 %v4369_v62, %v503_v3  ;;  %v505_v6 = vpop.f32.mrb[3].mxu0 }
 0x119   :  { %v3577_v7 = vpack.c.bf16 %v698_v4, %v698_v4  ;;  %v699_v8 = vmax.f32 %v504_v5, 0.0  ;;  %v4020_v4 = vld [vmem:[%s4827_s3 + $0x28] sm:$0xff]  }
 0x11b   :  { %945 = vst.msk [vmem:[#allocation2] sm:$0xf] %vm944_vm1, %v3577_v7  ;;  %v3578_v9 = vpack.c.bf16 %v699_v8, %v699_v8 }
 0x11c   :  { %v508_v10 = vpop.f32.mrb[4].mxu0 }
 0x11d   :  { %946 = vst.msk [vmem:[#allocation2 + $0x4] sm:$0xf] %vm944_vm1, %v3578_v9  ;;  %v509_v11 = vadd.f32 %v4369_v62, %v508_v10  ;;  %v510_v12 = vpop.f32.mrb[5].mxu0 }
 0x11e   :  { %v511_v13 = vpop.f32.mrb[6].mxu0 }
 0x11f   :  { %v700_v14 = vmax.f32 %v509_v11, 0.0  ;;  %v512_v15 = vadd.f32 %v4369_v62, %v511_v13  ;;  %v513_v16 = vpop.f32.mrb[7].mxu0  ;;  %v4024_v13 = vld [vmem:[%s4827_s3 + $0x30] sm:$0xff]  }
 0x121   :  { %v3579_v17 = vpack.c.bf16 %v700_v14, %v700_v14  ;;  %v701_v18 = vmax.f32 %v512_v15, 0.0 }
 0x122   :  { %v994_v33 = vld [vmem:[#allocation2] sm:$0xf] }
 0x123   :  { %947 = vst.msk [vmem:[#allocation2 + $0x8] sm:$0xf] %vm944_vm1, %v3579_v17  ;;  %v3580_v20 = vpack.c.bf16 %v701_v18, %v701_v18 }
 0x124   :  { %v997_v21 = vld [vmem:[#allocation2 + $0x4] sm:$0xf]  ;;  %v516_v22 = vpop.f32.mrb[8].mxu0 }
 0x125   :  { %948 = vst.msk [vmem:[#allocation2 + $0xc] sm:$0xf] %vm944_vm1, %v3580_v20  ;;  %3723 = vmatmul.mubr.msk.bf16.vlgmr.msra.gmra.mrb[0].mxu1 %vm1007_vm2, %v997_v21  ;;  %v517_v23 = vadd.f32 %v4369_v62, %v516_v22  ;;  %v518_v24 = vpop.f32.mrb[9].mxu0 }
 0x126   :  { %3727 = vmatpush3.bf16.msra.mxu1 %v4007_v19  ;;  %3728 = vmatprep.mubr.msk.bf16.mxu1 %vm4108_vm0, %v4107_v44  ;;  %v519_v25 = vpop.f32.mrb[10].mxu0  ;;  %v4025_v24 = vld [vmem:[%s4827_s3 + $0x38] sm:$0xff]  }
 0x127   :  { %3732 = vmatprep.subr.bf16.mxu1 %v4107_v44  ;;  %v702_v26 = vmax.f32 %v517_v23, 0.0  ;;  %v520_v27 = vadd.f32 %v4369_v62, %v519_v25  ;;  %v521_v28 = vpop.f32.mrb[11].mxu0 }
 0x129   :  { %v3581_v29 = vpack.c.bf16 %v702_v26, %v702_v26  ;;  %v703_v30 = vmax.f32 %v520_v27, 0.0 }
 0x12a   :  { %v1100_v40 = vld [vmem:[#allocation2 + $0x8] sm:$0xf] }
 0x12b   :  { %949 = vst.msk [vmem:[#allocation2 + $0x10] sm:$0xf] %vm944_vm1, %v3581_v29  ;;  %v3582_v32 = vpack.c.bf16 %v703_v30, %v703_v30 }
 0x12c   :  { %v524_v34 = vpop.f32.mrb[12].mxu0  ;;  %v1154_v55 = vld [vmem:[#allocation2 + $0xc] sm:$0xf] }
 0x12d   :  { %3729 = vmatmul.mubr.msk.bf16.vlgmr.msra.gmra.mrb[4].mxu1 %vm1007_vm2, %v994_v33  ;;  %950 = vst.msk [vmem:[#allocation2 + $0x14] sm:$0xf] %vm944_vm1, %v3582_v32  ;;  %v526_v35 = vpop.f32.mrb[13].mxu0 }
 0x12e   :  { %3733 = vmatpush3.bf16.msra.mxu1 %v4010_v31  ;;  %3734 = vmatprep.mubr.msk.bf16.mxu1 %vm4108_vm0, %v4107_v44  ;;  %v527_v36 = vpop.f32.mrb[14].mxu0 }
 0x12f   :  { %3738 = vmatprep.subr.bf16.mxu1 %v4107_v44  ;;  %v528_v37 = vadd.f32 %v4369_v62, %v527_v36  ;;  %v529_v38 = vpop.f32.mrb[15].mxu0 }
 0x131   :  { %v705_v39 = vmax.f32 %v528_v37, 0.0  ;;  %v4026_v37 = vld [vmem:[%s4827_s3 + $0x40] sm:$0xff]  }
 0x132   :  { %v1208_v3 = vld [vmem:[#allocation2 + $0x10] sm:$0xf] }
 0x133   :  { %v3584_v42 = vpack.c.bf16 %v705_v39, %v705_v39 }
 0x134   :  { %v532_v43 = vpop.f32.mrb[16].mxu0  ;;  %v1262_v14 = vld [vmem:[#allocation2 + $0x14] sm:$0xf] }
 0x135   :  { %3735 = vmatmul.mubr.msk.bf16.vlgmr.msra.gmra.mrb[8].mxu1 %vm1007_vm2, %v1100_v40  ;;  %952 = vst.msk [vmem:[#allocation2 + $0x1c] sm:$0xf] %vm944_vm1, %v3584_v42  ;;  %v533_v45 = vadd.f32 %v4369_v62, %v532_v43  ;;  %v534_v46 = vpop.f32.mrb[17].mxu0 }
 0x136   :  { %3739 = vmatpush3.bf16.msra.mxu1 %v4012_v41  ;;  %3740 = vmatprep.mubr.msk.bf16.mxu1 %vm4108_vm0, %v4107_v44  ;;  %v535_v47 = vpop.f32.mrb[18].mxu0 }
 0x137   :  { %3744 = vmatprep.subr.bf16.mxu1 %v4107_v44  ;;  %v706_v48 = vmax.f32 %v533_v45, 0.0  ;;  %v536_v49 = vadd.f32 %v4369_v62, %v535_v47  ;;  %v537_v50 = vpop.f32.mrb[19].mxu0 }
 0x139   :  { %v3585_v51 = vpack.c.bf16 %v706_v48, %v706_v48  ;;  %v707_v52 = vmax.f32 %v536_v49, 0.0  ;;  %v4028_v49 = vld [vmem:[%s4827_s3 + $0x48] sm:$0xff]  }
 0x13b   :  { %953 = vst.msk [vmem:[#allocation2 + $0x20] sm:$0xf] %vm944_vm1, %v3585_v51  ;;  %v3586_v54 = vpack.c.bf16 %v707_v52, %v707_v52 }
 0x13c   :  { %v540_v56 = vpop.f32.mrb[20].mxu0  ;;  %v1316_v26 = vld [vmem:[#allocation2 + $0x1c] sm:$0xf] }
 0x13d   :  { %3741 = vmatmul.mubr.msk.bf16.vlgmr.msra.gmra.mrb[12].mxu1 %vm1007_vm2, %v1154_v55  ;;  %954 = vst.msk [vmem:[#allocation2 + $0x24] sm:$0xf] %vm944_vm1, %v3586_v54  ;;  %v541_v57 = vadd.f32 %v4369_v62, %v540_v56  ;;  %v542_v58 = vpop.f32.mrb[21].mxu0 }
 0x13e   :  { %3745 = vmatpush3.bf16.msra.mxu1 %v4016_v53  ;;  %3746 = vmatprep.mubr.msk.bf16.mxu1 %vm4108_vm0, %v4107_v44  ;;  %v543_v59 = vpop.f32.mrb[22].mxu0 }
 0x13f   :  { %3750 = vmatprep.subr.bf16.mxu1 %v4107_v44  ;;  %v708_v60 = vmax.f32 %v541_v57, 0.0  ;;  %v544_v61 = vadd.f32 %v4369_v62, %v543_v59  ;;  %v545_v63 = vpop.f32.mrb[23].mxu0  ;;  %v4029_v59 = vld [vmem:[%s4827_s3 + $0x50] sm:$0xff]  }
 0x141   :  { %v3587_v1 = vpack.c.bf16 %v708_v60, %v708_v60  ;;  %v709_v2 = vmax.f32 %v544_v61, 0.0 }
 0x142   :  { %v1370_v36 = vld [vmem:[#allocation2 + $0x20] sm:$0xf] }
 0x143   :  { %955 = vst.msk [vmem:[#allocation2 + $0x28] sm:$0xf] %vm944_vm1, %v3587_v1  ;;  %v3588_v5 = vpack.c.bf16 %v709_v2, %v709_v2 }
 0x144   :  { %v548_v6 = vpop.f32.mrb[24].mxu0  ;;  %v1424_v51 = vld [vmem:[#allocation2 + $0x24] sm:$0xf] }
 0x145   :  { %3747 = vmatmul.mubr.msk.bf16.vlgmr.msra.gmra.mrb[16].mxu1 %vm1007_vm2, %v1208_v3  ;;  %956 = vst.msk [vmem:[#allocation2 + $0x2c] sm:$0xf] %vm944_vm1, %v3588_v5  ;;  %v549_v7 = vadd.f32 %v4369_v62, %v548_v6  ;;  %v550_v8 = vpop.f32.mrb[25].mxu0 }
 0x146   :  { %3751 = vmatpush3.bf16.msra.mxu1 %v4020_v4  ;;  %3752 = vmatprep.mubr.msk.bf16.mxu1 %vm4108_vm0, %v4107_v44  ;;  %v551_v9 = vpop.f32.mrb[26].mxu0  ;;  %v4030_v8 = vld [vmem:[%s4827_s3 + $0x58] sm:$0xff]  }
 0x147   :  { %3756 = vmatprep.subr.bf16.mxu1 %v4107_v44  ;;  %v710_v10 = vmax.f32 %v549_v7, 0.0  ;;  %v553_v11 = vpop.f32.mrb[27].mxu0 }
 0x149   :  { %v3589_v12 = vpack.c.bf16 %v710_v10, %v710_v10 }
 0x14a   :  { %v1478_v58 = vld [vmem:[#allocation2 + $0x28] sm:$0xf] }
 0x14b   :  { %957 = vst.msk [vmem:[#allocation2 + $0x30] sm:$0xf] %vm944_vm1, %v3589_v12 }
 0x14c   :  { %v556_v15 = vpop.f32.mrb[28].mxu0  ;;  %v1532_v10 = vld [vmem:[#allocation2 + $0x2c] sm:$0xf] }
 0x14d   :  { %3753 = vmatmul.mubr.msk.bf16.vlgmr.msra.gmra.mrb[20].mxu1 %vm1007_vm2, %v1262_v14  ;;  %v557_v16 = vadd.f32 %v4369_v62, %v556_v15  ;;  %v558_v17 = vpop.f32.mrb[29].mxu0 }
 0x14e   :  { %3757 = vmatpush3.bf16.msra.mxu1 %v4024_v13  ;;  %3758 = vmatprep.mubr.msk.bf16.mxu1 %vm4108_vm0, %v4107_v44  ;;  %v559_v18 = vpop.f32.mrb[30].mxu0 }
 0x14f   :  { %3762 = vmatprep.subr.bf16.mxu1 %v4107_v44  ;;  %v712_v19 = vmax.f32 %v557_v16, 0.0  ;;  %v560_v20 = vadd.f32 %v4369_v62, %v559_v18  ;;  %v561_v21 = vpop.f32.mrb[31].mxu0 }
 0x150   :  { %v4031_v21 = vld [vmem:[%s4827_s3 + $0x60] sm:$0xff]  }
 0x151   :  { %v3591_v22 = vpack.c.bf16 %v712_v19, %v712_v19  ;;  %v713_v23 = vmax.f32 %v560_v20, 0.0 }
 0x152   :  { %v1586_v20 = vld [vmem:[#allocation2 + $0x30] sm:$0xf] }
 0x153   :  { %959 = vst.msk [vmem:[#allocation2 + $0x38] sm:$0xf] %vm944_vm1, %v3591_v22  ;;  %v3592_v25 = vpack.c.bf16 %v713_v23, %v713_v23 }
 0x154   :  { %v564_v27 = vpop.f32.mrb[32].mxu0 }
 0x155   :  { %3759 = vmatmul.mubr.msk.bf16.vlgmr.msra.gmra.mrb[24].mxu1 %vm1007_vm2, %v1316_v26  ;;  %960 = vst.msk [vmem:[#allocation2 + $0x3c] sm:$0xf] %vm944_vm1, %v3592_v25  ;;  %v565_v28 = vadd.f32 %v4369_v62, %v564_v27  ;;  %v566_v29 = vpop.f32.mrb[33].mxu0 }
 0x156   :  { %3763 = vmatpush3.bf16.msra.mxu1 %v4025_v24  ;;  %3764 = vmatprep.mubr.msk.bf16.mxu1 %vm4108_vm0, %v4107_v44  ;;  %v567_v30 = vpop.f32.mrb[34].mxu0 }
 0x157   :  { %3768 = vmatprep.subr.bf16.mxu1 %v4107_v44  ;;  %v714_v31 = vmax.f32 %v565_v28, 0.0  ;;  %v568_v32 = vadd.f32 %v4369_v62, %v567_v30  ;;  %v569_v33 = vpop.f32.mrb[35].mxu0  ;;  %v4048_v30 = vld [vmem:[%s4826_s0 + $0x154] ss:$8 sps:$4 sm:$0xff]  }
 0x158   :  { %v4050_v33 = vld [vmem:[%s4826_s0 + $0x150] ss:$8 sps:$4 sm:$0xff]   ;;  %666 = vmatprep.mubr.bf16.mxu0 %v4048_v30 }
 0x159   :  { %v3593_v34 = vpack.c.bf16 %v714_v31, %v714_v31  ;;  %v715_v35 = vmax.f32 %v568_v32, 0.0  ;;  %v4032_v32 = vld [vmem:[%s4827_s3 + $0x68] sm:$0xff]   ;;  %667 = vmatmul.mubr.bf16.gmra.mrb[84].mxu0 %v4050_v33 }
 0x15a   :  { %v1640_v31 = vld [vmem:[#allocation2 + $0x38] sm:$0xf] }
 0x15b   :  { %961 = vst.msk [vmem:[#allocation2 + $0x40] sm:$0xf] %vm944_vm1, %v3593_v34  ;;  %v3594_v38 = vpack.c.bf16 %v715_v35, %v715_v35 }
 0x15c   :  { %v572_v39 = vpop.f32.mrb[36].mxu0 }
 0x15d   :  { %3765 = vmatmul.mubr.msk.bf16.vlgmr.msra.gmra.mrb[28].mxu1 %vm1007_vm2, %v1370_v36  ;;  %962 = vst.msk [vmem:[#allocation2 + $0x44] sm:$0xf] %vm944_vm1, %v3594_v38  ;;  %v573_v40 = vadd.f32 %v4369_v62, %v572_v39  ;;  %v574_v41 = vpop.f32.mrb[37].mxu0 }
 0x15e   :  { %3769 = vmatpush3.bf16.msra.mxu1 %v4026_v37  ;;  %3770 = vmatprep.mubr.msk.bf16.mxu1 %vm4108_vm0, %v4107_v44  ;;  %v575_v42 = vpop.f32.mrb[38].mxu0 }
 0x15f   :  { %3774 = vmatprep.subr.bf16.mxu1 %v4107_v44  ;;  %v716_v43 = vmax.f32 %v573_v40, 0.0  ;;  %v576_v45 = vadd.f32 %v4369_v62, %v575_v42  ;;  %v577_v46 = vpop.f32.mrb[39].mxu0 }
 0x160   :  { %v4054_v46 = vld [vmem:[%s4826_s0 + $0x160] ss:$8 sps:$4 sm:$0xff]  }
 0x161   :  { %v3595_v47 = vpack.c.bf16 %v716_v43, %v716_v43  ;;  %v717_v48 = vmax.f32 %v576_v45, 0.0  ;;  %v4052_v43 = vld [vmem:[%s4826_s0 + $0x164] ss:$8 sps:$4 sm:$0xff]   ;;  %v4033_v45 = vld [vmem:[%s4827_s3 + $0x70] sm:$0xff]  }
 0x162   :  { %674 = vmatprep.mubr.bf16.mxu0 %v4052_v43 }
 0x163   :  { %963 = vst.msk [vmem:[#allocation2 + $0x48] sm:$0xf] %vm944_vm1, %v3595_v47  ;;  %v3596_v50 = vpack.c.bf16 %v717_v48, %v717_v48  ;;  %v1694_v48 = vld [vmem:[#allocation2 + $0x3c] sm:$0xf]  ;;  %675 = vmatmul.mubr.bf16.gmra.mrb[88].mxu0 %v4054_v46 }
 0x164   :  { %v580_v52 = vpop.f32.mrb[40].mxu0 }
 0x165   :  { %3771 = vmatmul.mubr.msk.bf16.vlgmr.msra.gmra.mrb[32].mxu1 %vm1007_vm2, %v1424_v51  ;;  %964 = vst.msk [vmem:[#allocation2 + $0x4c] sm:$0xf] %vm944_vm1, %v3596_v50  ;;  %v582_v53 = vpop.f32.mrb[41].mxu0 }
 0x166   :  { %3775 = vmatpush3.bf16.msra.mxu1 %v4028_v49  ;;  %3776 = vmatprep.mubr.msk.bf16.mxu1 %vm4108_vm0, %v4107_v44  ;;  %v583_v54 = vpop.f32.mrb[42].mxu0 }
 0x167   :  { %3780 = vmatprep.subr.bf16.mxu1 %v4107_v44  ;;  %v584_v55 = vadd.f32 %v4369_v62, %v583_v54  ;;  %v585_v56 = vpop.f32.mrb[43].mxu0 }
 0x169   :  { %v719_v57 = vmax.f32 %v584_v55, 0.0 }
 0x16b   :  { %v3598_v60 = vpack.c.bf16 %v719_v57, %v719_v57 }
 0x16c   :  { %v588_v61 = vpop.f32.mrb[44].mxu0 }
 0x16d   :  { %3777 = vmatmul.mubr.msk.bf16.vlgmr.msra.gmra.mrb[36].mxu1 %vm1007_vm2, %v1478_v58  ;;  %966 = vst.msk [vmem:[#allocation2 + $0x54] sm:$0xf] %vm944_vm1, %v3598_v60  ;;  %v589_v63 = vadd.f32 %v4369_v62, %v588_v61  ;;  %v590_v1 = vpop.f32.mrb[45].mxu0  ;;  %v4056_v58 = vld [vmem:[%s4826_s0 + $0x174] ss:$8 sps:$4 sm:$0xff]  }
 0x16e   :  { %3781 = vmatpush3.bf16.msra.mxu1 %v4029_v59  ;;  %3782 = vmatprep.mubr.msk.bf16.mxu1 %vm4108_vm0, %v4107_v44  ;;  %v591_v2 = vpop.f32.mrb[46].mxu0  ;;  %v1748_v59 = vld [vmem:[#allocation2 + $0x40] sm:$0xf]  ;;  %v4034_v60 = vld [vmem:[%s4827_s3 + $0x78] sm:$0xff]  }
 0x16f   :  { %3786 = vmatprep.subr.bf16.mxu1 %v4107_v44  ;;  %v720_v3 = vmax.f32 %v589_v63, 0.0  ;;  %v592_v4 = vadd.f32 %v4369_v62, %v591_v2  ;;  %v593_v5 = vpop.f32.mrb[47].mxu0  ;;  %v4058_v61 = vld [vmem:[%s4826_s0 + $0x170] ss:$8 sps:$4 sm:$0xff]   ;;  %682 = vmatprep.mubr.bf16.mxu0 %v4056_v58 }
 0x170   :  { %683 = vmatmul.mubr.bf16.gmra.mrb[92].mxu0 %v4058_v61 }
 0x171   :  { %v3599_v6 = vpack.c.bf16 %v720_v3, %v720_v3  ;;  %v721_v7 = vmax.f32 %v592_v4, 0.0 }
 0x173   :  { %967 = vst.msk [vmem:[#allocation2 + $0x58] sm:$0xf] %vm944_vm1, %v3599_v6  ;;  %v3600_v9 = vpack.c.bf16 %v721_v7, %v721_v7 }
 0x174   :  { %v596_v11 = vpop.f32.mrb[48].mxu0 }
 0x175   :  { %3783 = vmatmul.mubr.msk.bf16.vlgmr.msra.gmra.mrb[40].mxu1 %vm1007_vm2, %v1532_v10  ;;  %968 = vst.msk [vmem:[#allocation2 + $0x5c] sm:$0xf] %vm944_vm1, %v3600_v9  ;;  %v597_v12 = vadd.f32 %v4369_v62, %v596_v11  ;;  %v598_v13 = vpop.f32.mrb[49].mxu0 }
 0x176   :  { %3787 = vmatpush3.bf16.msra.mxu1 %v4030_v8  ;;  %3788 = vmatprep.mubr.msk.bf16.mxu1 %vm4108_vm0, %v4107_v44  ;;  %v599_v14 = vpop.f32.mrb[50].mxu0  ;;  %v83_v8 = vld [vmem:[%s4826_s0 + $0x180] sm:$0xff] }
 0x177   :  { %3792 = vmatprep.subr.bf16.mxu1 %v4107_v44  ;;  %v722_v15 = vmax.f32 %v597_v12, 0.0  ;;  %v600_v16 = vadd.f32 %v4369_v62, %v599_v14  ;;  %v601_v17 = vpop.f32.mrb[51].mxu0  ;;  %v3335_v11 = vcombine.high %v83_v8, %v83_v8  ;;  %v4035_v12 = vld [vmem:[%s4827_s3 + $0x80] sm:$0xff]   ;;  %v3334_v13 = vcombine.low %v83_v8, %v83_v8  ;;  %v4044_v8 = vld [vmem:[%s4827_s3 + $0xc8] sm:$0xff]  }
 0x179   :  { %v3601_v18 = vpack.c.bf16 %v722_v15, %v722_v15  ;;  %v723_v19 = vmax.f32 %v600_v16, 0.0  ;;  %690 = vmatprep.mubr.bf16.mxu0 %v3335_v11  ;;  %v1802_v15 = vld [vmem:[#allocation2 + $0x44] sm:$0xf] }
 0x17a   :  { %691 = vmatmul.mubr.bf16.gmra.mrb[96].mxu0 %v3334_v13  ;;  %v2018_v58 = vld [vmem:[#allocation2 + $0x58] sm:$0xf] }
 0x17b   :  { %969 = vst.msk [vmem:[#allocation2 + $0x60] sm:$0xf] %vm944_vm1, %v3601_v18  ;;  %v3602_v22 = vpack.c.bf16 %v723_v19, %v723_v19  ;;  %3920 = vmatprep.mubr.msk.bf16.mxu0 %vm4108_vm0, %v4107_v44 }
 0x17c   :  { %v604_v23 = vpop.f32.mrb[52].mxu0 }
 0x17d   :  { %3789 = vmatmul.mubr.msk.bf16.vlgmr.msra.gmra.mrb[44].mxu1 %vm1007_vm2, %v1586_v20  ;;  %970 = vst.msk [vmem:[#allocation2 + $0x64] sm:$0xf] %vm944_vm1, %v3602_v22  ;;  %v605_v24 = vadd.f32 %v4369_v62, %v604_v23  ;;  %v606_v25 = vpop.f32.mrb[53].mxu0  ;;  %v1856_v22 = vld [vmem:[#allocation2 + $0x48] sm:$0xf] }
 0x17e   :  { %3793 = vmatpush3.bf16.msra.mxu1 %v4031_v21  ;;  %3794 = vmatprep.mubr.msk.bf16.mxu1 %vm4108_vm0, %v4107_v44  ;;  %v607_v26 = vpop.f32.mrb[54].mxu0  ;;  %v4036_v23 = vld [vmem:[%s4827_s3 + $0x88] sm:$0xff]  }
 0x17f   :  { %3798 = vmatprep.subr.bf16.mxu1 %v4107_v44  ;;  %v724_v27 = vmax.f32 %v605_v24, 0.0  ;;  %v609_v28 = vpop.f32.mrb[55].mxu0 }
 0x181   :  { %v3603_v29 = vpack.c.bf16 %v724_v27, %v724_v27 }
 0x183   :  { %971 = vst.msk [vmem:[#allocation2 + $0x68] sm:$0xf] %vm944_vm1, %v3603_v29 }
 0x184   :  { %v612_v34 = vpop.f32.mrb[56].mxu0 }
 0x185   :  { %3795 = vmatmul.mubr.msk.bf16.vlgmr.msra.gmra.mrb[48].mxu1 %vm1007_vm2, %v1640_v31  ;;  %v613_v35 = vadd.f32 %v4369_v62, %v612_v34  ;;  %v614_v36 = vpop.f32.mrb[57].mxu0  ;;  %v4037_v34 = vld [vmem:[%s4827_s3 + $0x90] sm:$0xff]  }
 0x186   :  { %3799 = vmatpush3.bf16.msra.mxu1 %v4032_v32  ;;  %3800 = vmatprep.mubr.msk.bf16.mxu1 %vm4108_vm0, %v4107_v44  ;;  %v615_v37 = vpop.f32.mrb[58].mxu0  ;;  %v1910_v36 = vld [vmem:[#allocation2 + $0x4c] sm:$0xf] }
 0x187   :  { %3804 = vmatprep.subr.bf16.mxu1 %v4107_v44  ;;  %v726_v38 = vmax.f32 %v613_v35, 0.0  ;;  %v616_v39 = vadd.f32 %v4369_v62, %v615_v37  ;;  %v617_v40 = vpop.f32.mrb[59].mxu0 }
 0x189   :  { %v3605_v41 = vpack.c.bf16 %v726_v38, %v726_v38  ;;  %v727_v42 = vmax.f32 %v616_v39, 0.0 }
 0x18b   :  { %973 = vst.msk [vmem:[#allocation2 + $0x70] sm:$0xf] %vm944_vm1, %v3605_v41  ;;  %v3606_v47 = vpack.c.bf16 %v727_v42, %v727_v42 }
 0x18c   :  { %v620_v49 = vpop.f32.mrb[60].mxu0 }
 0x18d   :  { %3801 = vmatmul.mubr.msk.bf16.vlgmr.msra.gmra.mrb[52].mxu1 %vm1007_vm2, %v1694_v48  ;;  %974 = vst.msk [vmem:[#allocation2 + $0x74] sm:$0xf] %vm944_vm1, %v3606_v47  ;;  %v621_v50 = vadd.f32 %v4369_v62, %v620_v49  ;;  %v622_v51 = vpop.f32.mrb[61].mxu0  ;;  %v4038_v47 = vld [vmem:[%s4827_s3 + $0x98] sm:$0xff]   ;;  %v1964_v49 = vld [vmem:[#allocation2 + $0x54] sm:$0xf] }
 0x18e   :  { %3805 = vmatpush3.bf16.msra.mxu1 %v4033_v45  ;;  %3806 = vmatprep.mubr.msk.bf16.mxu1 %vm4108_vm0, %v4107_v44  ;;  %v623_v52 = vpop.f32.mrb[62].mxu0 }
 0x18f   :  { %3810 = vmatprep.subr.bf16.mxu1 %v4107_v44  ;;  %v728_v53 = vmax.f32 %v621_v50, 0.0  ;;  %v624_v54 = vadd.f32 %v4369_v62, %v623_v52  ;;  %v625_v55 = vpop.f32.mrb[63].mxu0 }
 0x191   :  { %v3607_v56 = vpack.c.bf16 %v728_v53, %v728_v53  ;;  %v729_v57 = vmax.f32 %v624_v54, 0.0 }
 0x193   :  { %975 = vst.msk [vmem:[#allocation2 + $0x78] sm:$0xf] %vm944_vm1, %v3607_v56  ;;  %v3608_v63 = vpack.c.bf16 %v729_v57, %v729_v57  ;;  %v4064_v56 = vld [vmem:[%s4827_s3 + $0x118] sm:$0xff]  }
 0x194   :  { %v628_v1 = vpop.f32.mrb[64].mxu0 }
 0x195   :  { %3807 = vmatmul.mubr.msk.bf16.vlgmr.msra.gmra.mrb[56].mxu1 %vm1007_vm2, %v1748_v59  ;;  %976 = vst.msk [vmem:[#allocation2 + $0x7c] sm:$0xf] %vm944_vm1, %v3608_v63  ;;  %v629_v2 = vadd.f32 %v4369_v62, %v628_v1  ;;  %v630_v3 = vpop.f32.mrb[65].mxu0  ;;  %v2072_v63 = vld [vmem:[#allocation2 + $0x5c] sm:$0xf] }
 0x196   :  { %3811 = vmatpush3.bf16.msra.mxu1 %v4034_v60  ;;  %3812 = vmatprep.mubr.msk.bf16.mxu1 %vm4108_vm0, %v4107_v44  ;;  %v631_v4 = vpop.f32.mrb[66].mxu0  ;;  %v4040_v60 = vld [vmem:[%s4827_s3 + $0xa8] sm:$0xff]   ;;  %v2126_v1 = vld [vmem:[#allocation2 + $0x60] sm:$0xf]  ;;  %v4042_v3 = vld [vmem:[%s4827_s3 + $0xb8] sm:$0xff]  }
 0x197   :  { %3816 = vmatprep.subr.bf16.mxu1 %v4107_v44  ;;  %v730_v5 = vmax.f32 %v629_v2, 0.0  ;;  %v632_v6 = vadd.f32 %v4369_v62, %v631_v4  ;;  %v633_v7 = vpop.f32.mrb[67].mxu0  ;;  %v4041_v2 = vld [vmem:[%s4827_s3 + $0xb0] sm:$0xff]   ;;  %v2180_v4 = vld [vmem:[#allocation2 + $0x64] sm:$0xf] }
 0x198   :  { %v2288_v7 = vld [vmem:[#allocation2 + $0x70] sm:$0xf] }
 0x199   :  { %v3609_v9 = vpack.c.bf16 %v730_v5, %v730_v5  ;;  %v731_v10 = vmax.f32 %v632_v6, 0.0  ;;  %v2234_v5 = vld [vmem:[#allocation2 + $0x68] sm:$0xf]  ;;  %v4043_v6 = vld [vmem:[%s4827_s3 + $0xc0] sm:$0xff]  }
 0x19a   :  { %v2396_v11 = vld [vmem:[#allocation2 + $0x78] sm:$0xf] }
 0x19b   :  { %977 = vst.msk [vmem:[#allocation2 + $0x80] sm:$0xf] %vm944_vm1, %v3609_v9  ;;  %v3610_v14 = vpack.c.bf16 %v731_v10, %v731_v10  ;;  %v4045_v9 = vld [vmem:[%s4827_s3 + $0xd0] sm:$0xff]  }
 0x19c   :  { %v636_v16 = vpop.f32.mrb[68].mxu0  ;;  %v2342_v10 = vld [vmem:[#allocation2 + $0x74] sm:$0xf] }
 0x19d   :  { %3813 = vmatmul.mubr.msk.bf16.vlgmr.msra.gmra.mrb[60].mxu1 %vm1007_vm2, %v1802_v15  ;;  %978 = vst.msk [vmem:[#allocation2 + $0x84] sm:$0xf] %vm944_vm1, %v3610_v14  ;;  %v638_v17 = vpop.f32.mrb[69].mxu0  ;;  %v4047_v16 = vld [vmem:[%s4827_s3 + $0xe0] sm:$0xff]  }
 0x19e   :  { %3817 = vmatpush3.bf16.msra.mxu1 %v4035_v12  ;;  %3818 = vmatprep.mubr.msk.bf16.mxu1 %vm4108_vm0, %v4107_v44  ;;  %v639_v18 = vpop.f32.mrb[70].mxu0  ;;  %v4046_v12 = vld [vmem:[%s4827_s3 + $0xd8] sm:$0xff]  }
 0x19f   :  { %3822 = vmatprep.subr.bf16.mxu1 %v4107_v44  ;;  %v640_v19 = vadd.f32 %v4369_v62, %v639_v18  ;;  %v641_v20 = vpop.f32.mrb[71].mxu0  ;;  %v2450_v18 = vld [vmem:[#allocation2 + $0x7c] sm:$0xf] }
 0x1a1   :  { %v733_v21 = vmax.f32 %v640_v19, 0.0 }
 0x1a3   :  { %v3612_v24 = vpack.c.bf16 %v733_v21, %v733_v21 }
 0x1a4   :  { %v644_v25 = vpop.f32.mrb[72].mxu0 }
 0x1a5   :  { %3819 = vmatmul.mubr.msk.bf16.vlgmr.msra.gmra.mrb[64].mxu1 %vm1007_vm2, %v1856_v22  ;;  %980 = vst.msk [vmem:[#allocation2 + $0x8c] sm:$0xf] %vm944_vm1, %v3612_v24  ;;  %v645_v26 = vadd.f32 %v4369_v62, %v644_v25  ;;  %v646_v27 = vpop.f32.mrb[73].mxu0  ;;  %v4051_v24 = vld [vmem:[%s4827_s3 + $0xe8] sm:$0xff]  }
 0x1a6   :  { %3823 = vmatpush3.bf16.msra.mxu1 %v4036_v23  ;;  %3824 = vmatprep.mubr.msk.bf16.mxu1 %vm4108_vm0, %v4107_v44  ;;  %v647_v28 = vpop.f32.mrb[74].mxu0  ;;  %v2504_v23 = vld [vmem:[#allocation2 + $0x80] sm:$0xf] }
 0x1a7   :  { %3828 = vmatprep.subr.bf16.mxu1 %v4107_v44  ;;  %v734_v29 = vmax.f32 %v645_v26, 0.0  ;;  %v648_v30 = vadd.f32 %v4369_v62, %v647_v28  ;;  %v649_v31 = vpop.f32.mrb[75].mxu0 }
 0x1a9   :  { %v3613_v32 = vpack.c.bf16 %v734_v29, %v734_v29  ;;  %v735_v33 = vmax.f32 %v648_v30, 0.0  ;;  %v4055_v30 = vld [vmem:[%s4827_s3 + $0xf0] sm:$0xff]  }
 0x1ab   :  { %981 = vst.msk [vmem:[#allocation2 + $0x90] sm:$0xf] %vm944_vm1, %v3613_v32  ;;  %v3614_v35 = vpack.c.bf16 %v735_v33, %v735_v33  ;;  %v2558_v32 = vld [vmem:[#allocation2 + $0x84] sm:$0xf] }
 0x1ac   :  { %v652_v37 = vpop.f32.mrb[76].mxu0 }
 0x1ad   :  { %3825 = vmatmul.mubr.msk.bf16.vlgmr.msra.gmra.mrb[68].mxu1 %vm1007_vm2, %v1910_v36  ;;  %982 = vst.msk [vmem:[#allocation2 + $0x94] sm:$0xf] %vm944_vm1, %v3614_v35  ;;  %v653_v38 = vadd.f32 %v4369_v62, %v652_v37  ;;  %v654_v39 = vpop.f32.mrb[77].mxu0  ;;  %v4059_v37 = vld [vmem:[%s4827_s3 + $0xf8] sm:$0xff]  }
 0x1ae   :  { %3829 = vmatpush3.bf16.msra.mxu1 %v4037_v34  ;;  %3830 = vmatprep.mubr.msk.bf16.mxu1 %vm4108_vm0, %v4107_v44  ;;  %v655_v40 = vpop.f32.mrb[78].mxu0  ;;  %v2612_v39 = vld [vmem:[#allocation2 + $0x8c] sm:$0xf] }
 0x1af   :  { %3834 = vmatprep.subr.bf16.mxu1 %v4107_v44  ;;  %v736_v41 = vmax.f32 %v653_v38, 0.0  ;;  %v656_v42 = vadd.f32 %v4369_v62, %v655_v40  ;;  %v657_v43 = vpop.f32.mrb[79].mxu0 }
 0x1b1   :  { %v3615_v45 = vpack.c.bf16 %v736_v41, %v736_v41  ;;  %v737_v46 = vmax.f32 %v656_v42, 0.0 }
 0x1b3   :  { %983 = vst.msk [vmem:[#allocation2 + $0x98] sm:$0xf] %vm944_vm1, %v3615_v45  ;;  %v3616_v48 = vpack.c.bf16 %v737_v46, %v737_v46  ;;  %v2666_v45 = vld [vmem:[#allocation2 + $0x90] sm:$0xf]  ;;  %v4062_v46 = vld [vmem:[%s4827_s3 + $0x100] sm:$0xff]  }
 0x1b4   :  { %v660_v50 = vpop.f32.mrb[80].mxu0 }
 0x1b5   :  { %3831 = vmatmul.mubr.msk.bf16.vlgmr.msra.gmra.mrb[72].mxu1 %vm1007_vm2, %v1964_v49  ;;  %984 = vst.msk [vmem:[#allocation2 + $0x9c] sm:$0xf] %vm944_vm1, %v3616_v48  ;;  %v661_v51 = vadd.f32 %v4369_v62, %v660_v50  ;;  %v662_v52 = vpop.f32.mrb[81].mxu0  ;;  %v4039_v62 = vld [vmem:[%s4827_s3 + $0xa0] sm:$0xff]  }
 0x1b6   :  { %3835 = vmatpush3.bf16.msra.mxu1 %v4038_v47  ;;  %3836 = vmatprep.mubr.msk.bf16.mxu1 %vm4108_vm0, %v4107_v44  ;;  %v663_v53 = vpop.f32.mrb[82].mxu0  ;;  %v4063_v52 = vld [vmem:[%s4827_s3 + $0x110] sm:$0xff]  }
 0x1b7   :  { %3840 = vmatprep.subr.bf16.mxu1 %v4107_v44  ;;  %v738_v54 = vmax.f32 %v661_v51, 0.0  ;;  %v665_v55 = vpop.f32.mrb[83].mxu0 }
 0x1b9   :  { %v3617_v57 = vpack.c.bf16 %v738_v54, %v738_v54  ;;  %v2720_v54 = vld [vmem:[#allocation2 + $0x94] sm:$0xf] }
 0x1ba   :  { %v2774_v59 = vld [vmem:[#allocation2 + $0x98] sm:$0xf] }
 0x1bb   :  { %985 = vst.msk [vmem:[#allocation2 + $0xa0] sm:$0xf] %vm944_vm1, %v3617_v57  ;;  %3921 = vmatmul.mubr.msk.bf16.vlgmr.msra.gmra.mrb[100].mxu0 %vm1007_vm2, %v2774_v59 }
 0x1bc   :  { %3931 = vmatpush3.bf16.msra.mxu0 %v4064_v56  ;;  %3932 = vmatprep.mubr.msk.bf16.mxu0 %vm4108_vm0, %v4107_v44  ;;  %v2828_v59 = vld [vmem:[#allocation2 + $0x9c] sm:$0xf] }
 0x1bd   :  { %3837 = vmatmul.mubr.msk.bf16.vlgmr.msra.gmra.mrb[76].mxu1 %vm1007_vm2, %v2018_v58 }
 0x1be   :  { %3841 = vmatpush3.bf16.msra.mxu1 %v4039_v62  ;;  %3842 = vmatprep.mubr.msk.bf16.mxu1 %vm4108_vm0, %v4107_v44 }
 0x1bf   :  { %3846 = vmatprep.subr.bf16.mxu1 %v4107_v44 }
 0x1c2   :  { %v2882_v61 = vld [vmem:[#allocation2 + $0xa0] sm:$0xf] }
 0x1c3   :  { %3933 = vmatmul.mubr.msk.bf16.vlgmr.msra.gmra.mrb[104].mxu0 %vm1007_vm2, %v2882_v61 }
 0x1c5   :  { %3843 = vmatmul.mubr.msk.bf16.vlgmr.msra.gmra.mrb[80].mxu1 %vm1007_vm2, %v2072_v63 }
 0x1c6   :  { %3847 = vmatpush3.bf16.msra.mxu1 %v4040_v60  ;;  %3848 = vmatprep.mubr.msk.bf16.mxu1 %vm4108_vm0, %v4107_v44 }
 0x1c7   :  { %3852 = vmatprep.subr.bf16.mxu1 %v4107_v44 }
 0x1cd   :  { %3849 = vmatmul.mubr.msk.bf16.vlgmr.msra.gmra.mrb[84].mxu1 %vm1007_vm2, %v2126_v1 }
 0x1ce   :  { %3853 = vmatpush3.bf16.msra.mxu1 %v4041_v2  ;;  %3854 = vmatprep.mubr.msk.bf16.mxu1 %vm4108_vm0, %v4107_v44 }
 0x1cf   :  { %3858 = vmatprep.subr.bf16.mxu1 %v4107_v44 }
 0x1d5   :  { %3855 = vmatmul.mubr.msk.bf16.vlgmr.msra.gmra.mrb[88].mxu1 %vm1007_vm2, %v2180_v4 }
 0x1d6   :  { %3859 = vmatpush3.bf16.msra.mxu1 %v4042_v3  ;;  %3860 = vmatprep.mubr.msk.bf16.mxu1 %vm4108_vm0, %v4107_v44 }
 0x1d7   :  { %3864 = vmatprep.subr.bf16.mxu1 %v4107_v44 }
 0x1dd   :  { %3861 = vmatmul.mubr.msk.bf16.vlgmr.msra.gmra.mrb[92].mxu1 %vm1007_vm2, %v2234_v5 }
 0x1de   :  { %3865 = vmatpush3.bf16.msra.mxu1 %v4043_v6  ;;  %3866 = vmatprep.mubr.msk.bf16.mxu1 %vm4108_vm0, %v4107_v44 }
 0x1df   :  { %3870 = vmatprep.subr.bf16.mxu1 %v4107_v44 }
 0x1e5   :  { %3867 = vmatmul.mubr.msk.bf16.vlgmr.msra.gmra.mrb[96].mxu1 %vm1007_vm2, %v2288_v7 }
 0x1e6   :  { %3871 = vmatpush3.bf16.msra.mxu1 %v4044_v8  ;;  %3872 = vmatprep.mubr.msk.bf16.mxu1 %vm4108_vm0, %v4107_v44 }
 0x1e7   :  { %3876 = vmatprep.subr.bf16.mxu1 %v4107_v44 }
 0x1ed   :  { %3873 = vmatmul.mubr.msk.bf16.vlgmr.msra.gmra.mrb[100].mxu1 %vm1007_vm2, %v2342_v10 }
 0x1ee   :  { %3877 = vmatpush3.bf16.msra.mxu1 %v4045_v9  ;;  %3878 = vmatprep.mubr.msk.bf16.mxu1 %vm4108_vm0, %v4107_v44 }
 0x1ef   :  { %3882 = vmatprep.subr.bf16.mxu1 %v4107_v44 }
 0x1f5   :  { %3879 = vmatmul.mubr.msk.bf16.vlgmr.msra.gmra.mrb[104].mxu1 %vm1007_vm2, %v2396_v11 }
 0x1f6   :  { %3883 = vmatpush3.bf16.msra.mxu1 %v4046_v12  ;;  %3884 = vmatprep.mubr.msk.bf16.mxu1 %vm4108_vm0, %v4107_v44 }
 0x1f7   :  { %3888 = vmatprep.subr.bf16.mxu1 %v4107_v44 }
 0x1f8   :  { %v1045_v13 = vpop.f32.mrb[0].mxu1 }
 0x1f9   :  { %v3724_v14 = vpop.f32.mrb[1].mxu1 }
 0x1fa   :  { %v1048_v15 = vpop.f32.mrb[2].mxu1 }
 0x1fb   :  { %v3725_v17 = vpop.f32.mrb[3].mxu1 }
 0x1fd   :  { %3885 = vmatmul.mubr.msk.bf16.vlgmr.msra.gmra.mrb[108].mxu1 %vm1007_vm2, %v2450_v18 }
 0x1fe   :  { %3889 = vmatpush3.bf16.msra.mxu1 %v4047_v16  ;;  %3890 = vmatprep.mubr.msk.bf16.mxu1 %vm4108_vm0, %v4107_v44 }
 0x1ff   :  { %3894 = vmatprep.subr.bf16.mxu1 %v4107_v44 }
 0x200   :  { %v1094_v19 = vpop.f32.mrb[4].mxu1 }
 0x201   :  { %v1095_v20 = vadd.f32 %v1094_v19, %v1045_v13  ;;  %v3730_v21 = vpop.f32.mrb[5].mxu1 }
 0x202   :  { %v1097_v22 = vpop.f32.mrb[6].mxu1 }
 0x203   :  { %v3731_v25 = vpop.f32.mrb[7].mxu1 }
 0x205   :  { %3891 = vmatmul.mubr.msk.bf16.vlgmr.msra.gmra.mrb[112].mxu1 %vm1007_vm2, %v2504_v23 }
 0x206   :  { %3895 = vmatpush3.bf16.msra.mxu1 %v4051_v24  ;;  %3896 = vmatprep.mubr.msk.bf16.mxu1 %vm4108_vm0, %v4107_v44 }
 0x207   :  { %3900 = vmatprep.subr.bf16.mxu1 %v4107_v44 }
 0x208   :  { %v1147_v26 = vpop.f32.mrb[8].mxu1 }
 0x209   :  { %v1153_v27 = vadd.f32 %v1147_v26, %v1095_v20  ;;  %v3736_v28 = vpop.f32.mrb[9].mxu1 }
 0x20a   :  { %v1150_v29 = vpop.f32.mrb[10].mxu1 }
 0x20b   :  { %v3737_v31 = vpop.f32.mrb[11].mxu1 }
 0x20d   :  { %3897 = vmatmul.mubr.msk.bf16.vlgmr.msra.gmra.mrb[116].mxu1 %vm1007_vm2, %v2558_v32 }
 0x20e   :  { %3901 = vmatpush3.bf16.msra.mxu1 %v4055_v30  ;;  %3902 = vmatprep.mubr.msk.bf16.mxu1 %vm4108_vm0, %v4107_v44 }
 0x20f   :  { %3906 = vmatprep.subr.bf16.mxu1 %v4107_v44 }
 0x210   :  { %v1201_v33 = vpop.f32.mrb[12].mxu1 }
 0x211   :  { %v1207_v34 = vadd.f32 %v1201_v33, %v1153_v27  ;;  %v3742_v35 = vpop.f32.mrb[13].mxu1 }
 0x212   :  { %v1204_v36 = vpop.f32.mrb[14].mxu1 }
 0x213   :  { %v3743_v38 = vpop.f32.mrb[15].mxu1 }
 0x215   :  { %3903 = vmatmul.mubr.msk.bf16.vlgmr.msra.gmra.mrb[120].mxu1 %vm1007_vm2, %v2612_v39 }
 0x216   :  { %3907 = vmatpush3.bf16.msra.mxu1 %v4059_v37  ;;  %3908 = vmatprep.mubr.msk.bf16.mxu1 %vm4108_vm0, %v4107_v44 }
 0x217   :  { %3912 = vmatprep.subr.bf16.mxu1 %v4107_v44 }
 0x218   :  { %v1255_v40 = vpop.f32.mrb[16].mxu1 }
 0x219   :  { %v1261_v41 = vadd.f32 %v1255_v40, %v1207_v34  ;;  %v3748_v42 = vpop.f32.mrb[17].mxu1 }
 0x21a   :  { %v1258_v43 = vpop.f32.mrb[18].mxu1 }
 0x21b   :  { %v3749_v47 = vpop.f32.mrb[19].mxu1 }
 0x21d   :  { %3909 = vmatmul.mubr.msk.bf16.vlgmr.msra.gmra.mrb[124].mxu1 %vm1007_vm2, %v2666_v45 }
 0x21e   :  { %3913 = vmatpush3.bf16.msra.mxu1 %v4062_v46  ;;  %3914 = vmatprep.mubr.msk.bf16.mxu1 %vm4108_vm0, %v4107_v44  ;;  %v4067_v46 = vld [vmem:[%s4829_s5 + $0x4] ss:$8 sps:$4 sm:$0xff]  }
 0x21f   :  { %3924 = vmatprep.subr.bf16.mxu1 %v4107_v44 }
 0x220   :  { %v1309_v48 = vpop.f32.mrb[20].mxu1 }
 0x221   :  { %v1315_v49 = vadd.f32 %v1309_v48, %v1261_v41  ;;  %v3754_v50 = vpop.f32.mrb[21].mxu1 }
 0x222   :  { %v1312_v51 = vpop.f32.mrb[22].mxu1 }
 0x223   :  { %v3755_v53 = vpop.f32.mrb[23].mxu1  ;;  %v4068_v51 = vld [vmem:[%s4829_s5 + $0x10] ss:$8 sps:$4 sm:$0xff]  }
 0x225   :  { %3915 = vmatmul.mubr.msk.bf16.vlgmr.msra.gmra.mrb[128].mxu1 %vm1007_vm2, %v2720_v54 }
 0x226   :  { %3925 = vmatpush3.bf16.msra.mxu1 %v4063_v52  ;;  %3926 = vmatprep.mubr.msk.bf16.mxu1 %vm4108_vm0, %v4107_v44  ;;  %v4070_v52 = vld [vmem:[%s4829_s5 + $0x14] ss:$8 sps:$4 sm:$0xff]  }
 0x227   :  { %3054 = vmatprep.subr.bf16.mxu1 %v4067_v46  ;;  %v4097_v46 = vld [vmem:[%s4830_s7 + $0x60] sm:$0xff]  }
 0x228   :  { %v1363_v55 = vpop.f32.mrb[24].mxu1 }
 0x229   :  { %v1369_v56 = vadd.f32 %v1363_v55, %v1315_v49  ;;  %v3760_v57 = vpop.f32.mrb[25].mxu1  ;;  %v4065_v49 = vld [vmem:[%s4829_s5] ss:$8 sps:$4 sm:$0xff]  }
 0x22a   :  { %v1366_v58 = vpop.f32.mrb[26].mxu1 }
 0x22b   :  { %v3761_v62 = vpop.f32.mrb[27].mxu1 }
 0x22c   :  { %v668_v21 = vpop.f32.mrb[84].mxu0  ;;  %v4073_v62 = vld [vmem:[%s4829_s5 + $0x24] ss:$8 sps:$4 sm:$0xff]  }
 0x22d   :  { %3927 = vmatmul.mubr.msk.bf16.vlgmr.msra.gmra.mrb[132].mxu1 %vm1007_vm2, %v2828_v59  ;;  %v670_v23 = vpop.f32.mrb[85].mxu0 }
 0x22e   :  { %3086 = vmatprep.mubr.bf16.mxu1 %v4106_v0  ;;  %v671_v26 = vpop.f32.mrb[86].mxu0  ;;  %3055 = vmatpush1.bf16.msra.mxu1 %v4065_v49 }
 0x22f   :  { %v673_v28 = vpop.f32.mrb[87].mxu0  ;;  %3056 = vmatprep.subr.bf16.mxu1 %v4070_v52  ;;  %v4098_v52 = vld [vmem:[%s4830_s7 + $0x20] sm:$0xff]  }
 0x230   :  { %v1417_v60 = vpop.f32.mrb[28].mxu1 }
 0x231   :  { %v1423_v61 = vadd.f32 %v1417_v60, %v1369_v56  ;;  %v3766_v63 = vpop.f32.mrb[29].mxu1 }
 0x232   :  { %v1420_v1 = vpop.f32.mrb[30].mxu1  ;;  %3057 = vmatpush1.bf16.msra.mxu1 %v4068_v51 }
 0x233   :  { %v3767_v2 = vpop.f32.mrb[31].mxu1  ;;  %3058 = vmatprep.subr.bf16.mxu1 %v4073_v62  ;;  %v4076_v1 = vld [vmem:[%s4829_s5 + $0x34] ss:$8 sps:$4 sm:$0xff]  }
 0x234   :  { %v4074_v2 = vld [vmem:[%s4829_s5 + $0x30] ss:$8 sps:$4 sm:$0xff]  }
 0x236   :  { %v676_v30 = vpop.f32.mrb[88].mxu0 }
 0x237   :  { %v678_v32 = vpop.f32.mrb[89].mxu0 }
 0x238   :  { %v1471_v3 = vpop.f32.mrb[32].mxu1  ;;  %v679_v35 = vpop.f32.mrb[90].mxu0 }
 0x239   :  { %v1477_v4 = vadd.f32 %v1471_v3, %v1423_v61  ;;  %v3772_v5 = vpop.f32.mrb[33].mxu1  ;;  %v681_v37 = vpop.f32.mrb[91].mxu0  ;;  %v4071_v61 = vld [vmem:[%s4829_s5 + $0x20] ss:$8 sps:$4 sm:$0xff]   ;;  %v4093_v35 = vld [vmem:[%s4830_s7 + $0x50] sm:$0xff]  }
 0x23a   :  { %v1474_v6 = vpop.f32.mrb[34].mxu1  ;;  %3059 = vmatpush1.bf16.msra.mxu1 %v4071_v61  ;;  %v4094_v37 = vld [vmem:[%s4830_s7 + $0x10] sm:$0xff]  }
 0x23b   :  { %v3773_v44 = vpop.f32.mrb[35].mxu1  ;;  %3060 = vmatprep.subr.bf16.mxu1 %v4076_v1  ;;  %v4079_v6 = vld [vmem:[%s4829_s5 + $0x44] ss:$8 sps:$4 sm:$0xff]  }
 0x23e   :  { %3061 = vmatpush1.bf16.msra.mxu1 %v4074_v2 }
 0x23f   :  { %3062 = vmatprep.subr.bf16.mxu1 %v4079_v6 }
 0x240   :  { %v1525_v7 = vpop.f32.mrb[36].mxu1 }
 0x241   :  { %v1531_v8 = vadd.f32 %v1525_v7, %v1477_v4  ;;  %v3778_v9 = vpop.f32.mrb[37].mxu1  ;;  %v4077_v7 = vld [vmem:[%s4829_s5 + $0x40] ss:$8 sps:$4 sm:$0xff]  }
 0x242   :  { %v1528_v10 = vpop.f32.mrb[38].mxu1  ;;  %v4082_v9 = vld [vmem:[%s4829_s5 + $0x54] ss:$8 sps:$4 sm:$0xff]   ;;  %3063 = vmatpush1.bf16.msra.mxu1 %v4077_v7 }
 0x243   :  { %v3779_v11 = vpop.f32.mrb[39].mxu1  ;;  %v684_v39 = vpop.f32.mrb[92].mxu0  ;;  %v4080_v10 = vld [vmem:[%s4829_s5 + $0x50] ss:$8 sps:$4 sm:$0xff]   ;;  %3064 = vmatprep.subr.bf16.mxu1 %v4082_v9 }
 0x244   :  { %v686_v41 = vpop.f32.mrb[93].mxu0  ;;  %v4095_v39 = vld [vmem:[%s4830_s7 + $0x58] sm:$0xff]  }
 0x245   :  { %v687_v45 = vpop.f32.mrb[94].mxu0 }
 0x246   :  { %v689_v48 = vpop.f32.mrb[95].mxu0  ;;  %3065 = vmatpush1.bf16.msra.mxu1 %v4080_v10 }
 0x248   :  { %v1579_v12 = vpop.f32.mrb[40].mxu1 }
 0x249   :  { %v1585_v13 = vadd.f32 %v1579_v12, %v1531_v8  ;;  %v3784_v14 = vpop.f32.mrb[41].mxu1 }
 0x24a   :  { %v1582_v15 = vpop.f32.mrb[42].mxu1  ;;  %v4085_v14 = vld [vmem:[%s4829_s5 + $0x64] ss:$8 sps:$4 sm:$0xff]  }
 0x24b   :  { %v3785_v0 = vpop.f32.mrb[43].mxu1  ;;  %3066 = vmatprep.subr.bf16.mxu1 %v4085_v14 }
 0x24c   :  { %v4083_v0 = vld [vmem:[%s4829_s5 + $0x60] ss:$8 sps:$4 sm:$0xff]  }
 0x24d   :  { %v692_v53 = vpop.f32.mrb[96].mxu0  ;;  %3067 = vmatpush1.bf16.msra.mxu1 %v4083_v0 }
 0x24e   :  { %v694_v55 = vpop.f32.mrb[97].mxu0  ;;  %v4099_v53 = vld [vmem:[%s4830_s7 + $0x68] sm:$0xff]  }
 0x24f   :  { %v695_v58 = vpop.f32.mrb[98].mxu0 }
 0x250   :  { %v1633_v16 = vpop.f32.mrb[44].mxu1  ;;  %v696_v60 = vpop.f32.mrb[99].mxu0 }
 0x251   :  { %v1639_v17 = vadd.f32 %v1633_v16, %v1585_v13  ;;  %v3790_v18 = vpop.f32.mrb[45].mxu1 }
 0x252   :  { %v1636_v19 = vpop.f32.mrb[46].mxu1  ;;  %v4086_v18 = vld [vmem:[%s4829_s5 + $0x70] ss:$8 sps:$4 sm:$0xff]  }
 0x253   :  { %v3791_v20 = vpop.f32.mrb[47].mxu1 }
 0x258   :  { %v1687_v22 = vpop.f32.mrb[48].mxu1 }
 0x259   :  { %v1693_v24 = vadd.f32 %v1687_v22, %v1639_v17  ;;  %v3796_v25 = vpop.f32.mrb[49].mxu1  ;;  %v4088_v17 = vld [vmem:[%s4829_s5 + $0x74] ss:$8 sps:$4 sm:$0xff]  }
 0x25a   :  { %v1690_v27 = vpop.f32.mrb[50].mxu1  ;;  %3068 = vmatprep.subr.bf16.mxu1 %v4088_v17  ;;  %v4090_v25 = vld [vmem:[%s4830_s7] sm:$0xff]  }
 0x25b   :  { %v3797_v29 = vpop.f32.mrb[51].mxu1  ;;  %3069 = vmatpush1.bf16.msra.mxu1 %v4086_v18  ;;  %v4091_v27 = vld [vmem:[%s4830_s7 + $0x48] sm:$0xff]  }
 0x25c   :  { %v4092_v29 = vld [vmem:[%s4830_s7 + $0x8] sm:$0xff]  }
 0x260   :  { %v1741_v31 = vpop.f32.mrb[52].mxu1 }
 0x261   :  { %v1747_v33 = vadd.f32 %v1741_v31, %v1693_v24  ;;  %v3802_v34 = vpop.f32.mrb[53].mxu1  ;;  %v4089_v24 = vld [vmem:[%s4830_s7 + $0x40] sm:$0xff]  }
 0x262   :  { %v1744_v36 = vpop.f32.mrb[54].mxu1  ;;  %3698 = vmatprep.subr.bf16.mxu0 %v4089_v24 }
 0x263   :  { %v3803_v38 = vpop.f32.mrb[55].mxu1  ;;  %3699 = vmatpush3.bf16.msra.mxu0 %v4090_v25 }
 0x264   :  { %3700 = vmatprep.subr.bf16.mxu0 %v4091_v27 }
 0x267   :  { %3701 = vmatpush3.bf16.msra.mxu0 %v4092_v29 }
 0x268   :  { %v1795_v40 = vpop.f32.mrb[56].mxu1  ;;  %3702 = vmatprep.subr.bf16.mxu0 %v4093_v35 }
 0x269   :  { %v1801_v42 = vadd.f32 %v1795_v40, %v1747_v33  ;;  %v3808_v43 = vpop.f32.mrb[57].mxu1 }
 0x26a   :  { %v1798_v47 = vpop.f32.mrb[58].mxu1 }
 0x26b   :  { %v3809_v50 = vpop.f32.mrb[59].mxu1  ;;  %3703 = vmatpush3.bf16.msra.mxu0 %v4094_v37 }
 0x26c   :  { %3704 = vmatprep.subr.bf16.mxu0 %v4095_v39 }
 0x270   :  { %v1849_v54 = vpop.f32.mrb[60].mxu1 }
 0x271   :  { %v1855_v56 = vadd.f32 %v1849_v54, %v1801_v42  ;;  %v3814_v57 = vpop.f32.mrb[61].mxu1  ;;  %v4096_v42 = vld [vmem:[%s4830_s7 + $0x18] sm:$0xff]   ;;  %v4100_v54 = vld [vmem:[%s4830_s7 + $0x28] sm:$0xff]  }
 0x272   :  { %v1852_v59 = vpop.f32.mrb[62].mxu1  ;;  %3705 = vmatpush3.bf16.msra.mxu0 %v4096_v42 }
 0x273   :  { %v3815_v63 = vpop.f32.mrb[63].mxu1  ;;  %3706 = vmatprep.subr.bf16.mxu0 %v4097_v46 }
 0x276   :  { %3707 = vmatpush3.bf16.msra.mxu0 %v4098_v52 }
 0x277   :  { %3708 = vmatprep.subr.bf16.mxu0 %v4099_v53 }
 0x278   :  { %v1903_v3 = vpop.f32.mrb[64].mxu1 }
 0x279   :  { %v1909_v4 = vadd.f32 %v1903_v3, %v1855_v56  ;;  %v3820_v5 = vpop.f32.mrb[65].mxu1 }
 0x27a   :  { %v1906_v44 = vpop.f32.mrb[66].mxu1  ;;  %3709 = vmatpush3.bf16.msra.mxu0 %v4100_v54 }
 0x27b   :  { %v3821_v8 = vpop.f32.mrb[67].mxu1 }
 0x280   :  { %v1957_v11 = vpop.f32.mrb[68].mxu1 }
 0x281   :  { %v1963_v12 = vadd.f32 %v1957_v11, %v1909_v4  ;;  %v3826_v13 = vpop.f32.mrb[69].mxu1 }
 0x282   :  { %v1960_v15 = vpop.f32.mrb[70].mxu1 }
 0x283   :  { %v3827_v16 = vpop.f32.mrb[71].mxu1 }
 0x288   :  { %v2011_v19 = vpop.f32.mrb[72].mxu1 }
 0x289   :  { %v2017_v20 = vadd.f32 %v2011_v19, %v1963_v12  ;;  %v3832_v21 = vpop.f32.mrb[73].mxu1 }
 0x28a   :  { %v2014_v22 = vpop.f32.mrb[74].mxu1 }
 0x28b   :  { %v3833_v23 = vpop.f32.mrb[75].mxu1 }
 0x28e   :  { %v4759_v26 = vpop.f32.mrb[100].mxu0 }
 0x28f   :  { %v3922_v28 = vpop.f32.mrb[101].mxu0 }
 0x290   :  { %v2065_v30 = vpop.f32.mrb[76].mxu1  ;;  %v2824_v31 = vpop.f32.mrb[102].mxu0 }
 0x291   :  { %v2071_v32 = vadd.f32 %v2065_v30, %v2017_v20  ;;  %v3838_v33 = vpop.f32.mrb[77].mxu1  ;;  %v3923_v34 = vpop.f32.mrb[103].mxu0 }
 0x292   :  { %v2068_v36 = vpop.f32.mrb[78].mxu1 }
 0x293   :  { %v3839_v38 = vpop.f32.mrb[79].mxu1 }
 0x296   :  { %v4776_v40 = vpop.f32.mrb[104].mxu0 }
 0x297   :  { %v3934_v41 = vpop.f32.mrb[105].mxu0 }
 0x298   :  { %v2119_v43 = vpop.f32.mrb[80].mxu1  ;;  %v2932_v45 = vpop.f32.mrb[106].mxu0 }
 0x299   :  { %v2125_v47 = vadd.f32 %v2119_v43, %v2071_v32  ;;  %v3844_v48 = vpop.f32.mrb[81].mxu1  ;;  %v3935_v49 = vpop.f32.mrb[107].mxu0 }
 0x29a   :  { %v2122_v50 = vpop.f32.mrb[82].mxu1 }
 0x29b   :  { %v3845_v51 = vpop.f32.mrb[83].mxu1 }
 0x2a0   :  { %v2173_v55 = vpop.f32.mrb[84].mxu1 }
 0x2a1   :  { %v2179_v56 = vadd.f32 %v2173_v55, %v2125_v47  ;;  %v3850_v57 = vpop.f32.mrb[85].mxu1 }
 0x2a2   :  { %v2176_v58 = vpop.f32.mrb[86].mxu1  ;;  %v3543_v57 = vld [vmem:[%s4831_s4] ss:$0 sm:$0xff] }
 0x2a3   :  { %v3851_v62 = vpop.f32.mrb[87].mxu1 }
 0x2a8   :  { %v2227_v59 = vpop.f32.mrb[88].mxu1 }
 0x2a9   :  { %v2233_v60 = vadd.f32 %v2227_v59, %v2179_v56  ;;  %v3856_v61 = vpop.f32.mrb[89].mxu1 }
 0x2aa   :  { %v2230_v63 = vpop.f32.mrb[90].mxu1 }
 0x2ab   :  { %v3857_v1 = vpop.f32.mrb[91].mxu1 }
 0x2ac   :  { %v4101_v1 = vld [vmem:[%s4830_s7 + $0x70] sm:$0xff]  }
 0x2ad   :  { %3710 = vmatprep.subr.bf16.mxu0 %v4101_v1 }
 0x2b0   :  { %v2281_v2 = vpop.f32.mrb[92].mxu1 }
 0x2b1   :  { %v2287_v3 = vadd.f32 %v2281_v2, %v2233_v60  ;;  %v3862_v4 = vpop.f32.mrb[93].mxu1  ;;  %v4103_v2 = vld [vmem:[%s4830_s7 + $0x78] sm:$0xff]  }
 0x2b2   :  { %v2284_v5 = vpop.f32.mrb[94].mxu1 }
 0x2b3   :  { %v3863_v6 = vpop.f32.mrb[95].mxu1 }
 0x2b4   :  { %v2962_v6 = vld [vmem:[%s4832_s6] sm:$0x3] }
 0x2b8   :  { %v2335_v44 = vpop.f32.mrb[96].mxu1 }
 0x2b9   :  { %v2341_v7 = vadd.f32 %v2335_v44, %v2287_v3  ;;  %v3868_v8 = vpop.f32.mrb[97].mxu1  ;;  %v2964_v3 = vlaneseq }
 0x2ba   :  { %v2338_v9 = vpop.f32.mrb[98].mxu1 }
 0x2bb   :  { %v3869_v10 = vpop.f32.mrb[99].mxu1  ;;  %v2965_v4 = vshrl.u32 %v2964_v3, 7 }
 0x2bd   :  { %v2966_v5 = vsub.s32 0, %v2965_v4  ;;  %v2970_v44 = vsub.s32 1, %v2965_v4 }
 0x2bf   :  { %v2971_v8 = vrot.slane %v2962_v6, %v2970_v44 }
 0x2c0   :  { %v2389_v11 = vpop.f32.mrb[100].mxu1 }
 0x2c1   :  { %v2395_v12 = vadd.f32 %v2389_v11, %v2341_v7  ;;  %v3874_v13 = vpop.f32.mrb[101].mxu1  ;;  %v2967_v7 = vrot.slane %v2962_v6, %v2966_v5 }
 0x2c2   :  { %v2392_v14 = vpop.f32.mrb[102].mxu1 }
 0x2c3   :  { %v3875_v15 = vpop.f32.mrb[103].mxu1 }
 0x2c8   :  { %v2443_v0 = vpop.f32.mrb[104].mxu1 }
 0x2c9   :  { %v2449_v16 = vadd.f32 %v2443_v0, %v2395_v12  ;;  %v3880_v17 = vpop.f32.mrb[105].mxu1 }
 0x2ca   :  { %v2446_v18 = vpop.f32.mrb[106].mxu1 }
 0x2cb   :  { %v3881_v19 = vpop.f32.mrb[107].mxu1 }
 0x2cc   :  { %v3560_v19 = vld [vmem:[%s4834_s8] ss:$0 sm:$0xff] }
 0x2d0   :  { %v2497_v20 = vpop.f32.mrb[108].mxu1 }
 0x2d1   :  { %v2503_v21 = vadd.f32 %v2497_v20, %v2449_v16  ;;  %v3886_v22 = vpop.f32.mrb[109].mxu1 }
 0x2d2   :  { %v2500_v23 = vpop.f32.mrb[110].mxu1 }
 0x2d3   :  { %v3887_v24 = vpop.f32.mrb[111].mxu1 }
 0x2d8   :  { %v2551_v25 = vpop.f32.mrb[112].mxu1 }
 0x2d9   :  { %v2557_v27 = vadd.f32 %v2551_v25, %v2503_v21  ;;  %v3892_v28 = vpop.f32.mrb[113].mxu1 }
 0x2da   :  { %v2554_v29 = vpop.f32.mrb[114].mxu1 }
 0x2db   :  { %v3893_v30 = vpop.f32.mrb[115].mxu1 }
 0x2e0   :  { %v2605_v31 = vpop.f32.mrb[116].mxu1 }
 0x2e1   :  { %v2611_v32 = vadd.f32 %v2605_v31, %v2557_v27  ;;  %v3898_v33 = vpop.f32.mrb[117].mxu1 }
 0x2e2   :  { %v2608_v34 = vpop.f32.mrb[118].mxu1 }
 0x2e3   :  { %v3899_v35 = vpop.f32.mrb[119].mxu1 }
 0x2e8   :  { %v2659_v36 = vpop.f32.mrb[120].mxu1 }
 0x2e9   :  { %v2665_v37 = vadd.f32 %v2659_v36, %v2611_v32  ;;  %v3904_v38 = vpop.f32.mrb[121].mxu1 }
 0x2ea   :  { %v2662_v39 = vpop.f32.mrb[122].mxu1 }
 0x2eb   :  { %v3905_v41 = vpop.f32.mrb[123].mxu1 }
 0x2f0   :  { %v2713_v42 = vpop.f32.mrb[124].mxu1 }
 0x2f1   :  { %v2719_v43 = vadd.f32 %v2713_v42, %v2665_v37  ;;  %v3910_v45 = vpop.f32.mrb[125].mxu1 }
 0x2f2   :  { %v2716_v46 = vpop.f32.mrb[126].mxu1 }
 0x2f3   :  { %v3911_v47 = vpop.f32.mrb[127].mxu1 }
 0x2f8   :  { %v2767_v48 = vpop.f32.mrb[128].mxu1 }
 0x2f9   :  { %v2773_v49 = vadd.f32 %v2767_v48, %v2719_v43  ;;  %v3916_v50 = vpop.f32.mrb[129].mxu1 }
 0x2fa   :  { %v2770_v51 = vpop.f32.mrb[130].mxu1 }
 0x2fb   :  { %v3917_v52 = vpop.f32.mrb[131].mxu1  ;;  %v2827_v53 = vadd.f32 %v4759_v26, %v2773_v49  ;;  %v4102_v26 = vld [vmem:[%s4830_s7 + $0x30] sm:$0xff]  }
 0x2fc   :  { %3711 = vmatpush3.bf16.msra.mxu0 %v4102_v26 }
 0x2fd   :  { %3712 = vmatprep.subr.bf16.mxu0 %v4103_v2 }
 0x300   :  { %v2875_v54 = vpop.f32.mrb[132].mxu1 }
 0x301   :  { %v2881_v55 = vadd.f32 %v2875_v54, %v2827_v53  ;;  %v3928_v56 = vpop.f32.mrb[133].mxu1 }
 0x302   :  { %v2878_v58 = vpop.f32.mrb[134].mxu1 }
 0x303   :  { %v2935_v62 = vadd.f32 %v4776_v40, %v2881_v55  ;;  %v3929_v59 = vpop.f32.mrb[135].mxu1  ;;  %v4104_v40 = vld [vmem:[%s4830_s7 + $0x38] sm:$0xff]  }
 0x304   :  { %3713 = vmatpush3.bf16.msra.mxu0 %v4104_v40 }
 0x305   :  { %v2943_v60 = vadd.f32 %v3543_v57, %v2935_v62 }
 0x307   :  { %v2944_v61 = vmax.f32 %v2943_v60, 0.0 }
 0x309   :  { %v2945_v63 = vpack.c.bf16 %v2944_v61, %v2944_v61 }
 0x30b   :  { %3087 = vmatmul.mubr.bf16.vlgmr.msra.gmra.mrb[136].mxu1 %v2945_v63 }
 0x3de   :  { %v3088_v9 = vpop.f32.mrb[136].mxu1 }
 0x3df   :  { %v3089_v10 = vadd.f32 %v3088_v9, %v2967_v7  ;;  %v3090_v11 = vpop.f32.mrb[137].mxu1 }
 0x3e0   :  { %v3091_v12 = vadd.f32 %v3090_v11, %v2971_v8  ;;  %v3092_v13 = vpop.f32.mrb[138].mxu1 }
 0x3e1   :  { %3095 = vst [vmem:[%s4833_s9] sm:$0xff] %v3089_v10  ;;  %v3097_v14 = vmax.f32 %v3089_v10, 0.0  ;;  %v3093_v15 = vpop.f32.mrb[139].mxu1 }
 0x3e2   :  { %3096 = vst [vmem:[%s4833_s9 + $0x8] sm:$0xff] %v3091_v12  ;;  %v3098_v0 = vmax.f32 %v3091_v12, 0.0 }
 0x3e3   :  { %v3099_v17 = vpack.c.bf16 %v3097_v14, %v3097_v14 }
 0x3e4   :  { %v3100_v16 = vpack.c.bf16 %v3098_v0, %v3098_v0 }
 0x3e6   :  { %3268 = vmatprep.mubr.bf16.mxu0 %v3100_v16 }
 0x3e7   :  { %3269 = vmatmul.mubr.bf16.vlgmr.msra.gmra.mrb[108].mxu0 %v3099_v17 }
 0x4ba   :  { %v3714_v18 = vpop.f32.mrb[108].mxu0 }
 0x4bb   :  { %v3715_v20 = vpop.f32.mrb[109].mxu0 }
 0x4bc   :  { %v3716_v21 = vadd.f32 %v3715_v20, %v3714_v18  ;;  %v3717_v22 = vpop.f32.mrb[110].mxu0 }
 0x4bd   :  { %v3718_v23 = vpop.f32.mrb[111].mxu0 }
 0x4be   :  { %v3271_v24 = vadd.f32 %v3716_v21, %v3560_v19 }
 0x4c0   :  { %3276 = vst [vmem:[%s4835_s10] sm:$0xff] %v3271_v24 }

</bundles_post_ra>
